<compile_context>
chip_gen: v7x
topology: tpu7x:2x2x1
jax: 0.10.0
libtpu: 0.0.40
codegen_flags: <defaults>
</compile_context>

<pallas_src>
import jax
import jax.numpy as jnp
from jax import lax
from jax.experimental import pallas as pl
from jax.experimental.pallas import tpu as pltpu

BN_EPS = 1e-5
LANE = 128
MID_LEFT_HALO = 16    # bf16 sublane tile -> sublane-aligned staging interior store


def _round_up(c, m=LANE):
    return ((c + m - 1) // m) * m


def _vmem_limit_bytes():
    # Per-generation scoped-VMEM budget: ~48 MiB on 64 MiB parts (v7x), ~96 MiB on
    # 128 MiB parts (v5e/v6e); leaves headroom for compiler-internal scratch.
    try:
        cap = pltpu.get_tpu_info().vmem_capacity_bytes
    except Exception:
        cap = 64 * 1024 * 1024
    return max(32 * 1024 * 1024, min(int(cap * 3 // 4), 100 * 1024 * 1024))


def _conv3x3_dysplit(a_ref, w_ref, H, W, left, cout):
    """3x3 conv of a zero-haloed bf16 staging ref via dy-split im2col matmuls.

    a_ref: (1, rows, cols, Cin) bf16; output pixel (y, x) taps a[y+dy, x+dx-1+left].
    w_ref: (9*Cin, cout) bf16, rows packed (dy, dx, ci)-major.
    Returns a (H*W, cout) f32 accumulator.
    """
    Cin = a_ref.shape[-1]
    rows = a_ref.shape[1]
    K3 = 3 * Cin
    # dx shifts done ONCE per conv: 3 W-axis ref slices concatenated at 128-lane
    # boundaries -> (rows, W, 3*Cin) bf16 (never materializes the 9*Cin patch).
    dxcat = jnp.concatenate(
        [a_ref[:, :, left - 1 + dx: left - 1 + dx + W, :] for dx in range(3)],
        axis=-1).reshape(rows, W, K3)
    # dy split: 3 partial matmuls of K = 3*Cin accumulated in-place (f32 acc).
    acc = jnp.zeros((H * W, cout), jnp.float32)
    for dy in range(3):
        patch = dxcat[dy:dy + H].reshape(H * W, K3)
        acc = acc + jnp.dot(patch, w_ref[dy * K3:(dy + 1) * K3, :],
                            preferred_element_type=jnp.float32)
    return acc


def _conv1_kernel(x_ref, w1_ref, y1_ref, st1_ref):
    # x_ref: (1, H+2, W+2, Ci_p) bf16 zero-haloed image tile.
    _, Hp, Wp, _ = x_ref.shape
    H, W = Hp - 2, Wp - 2
    Cf = y1_ref.shape[-1]
    acc = _conv3x3_dysplit(x_ref, w1_ref, H, W, 1, Cf)          # (H*W, Cf) f32
    y1_ref[...] = acc.reshape(1, H, W, Cf)
    # Per-tile BN1 partial statistics; reduced across the grid in the wrapper.
    s = jnp.sum(acc, axis=0, keepdims=True)
    ss = jnp.sum(acc * acc, axis=0, keepdims=True)
    st1_ref[...] = jnp.concatenate([s, ss], axis=0).reshape(1, 2, Cf)


def _conv2_kernel(y1_ref, sc1_ref, sh1_ref, w2_ref, y2_ref, st2_ref, mid_ref):
    # y1_ref: (1, H, W, Cf_p) f32 raw conv1 output tile.
    _, H, W, Cf = y1_ref.shape
    Co = y2_ref.shape[-1]
    Hp = H + 2
    LEFT = mid_ref.shape[2] - W - 1

    # bn1 folded into one FMA (scale/shift precomputed in the wrapper) + ReLU;
    # cast to bf16 only at the patch boundary (BN math stays f32 on the f32 acc).
    v = y1_ref[...].reshape(H * W, Cf)
    y1 = jnp.maximum(v * sc1_ref[...] + sh1_ref[...], 0.0).astype(jnp.bfloat16)

    # Zero ONLY the 1-px halo that conv2 actually reads.  The scratch persists
    # across grid steps (and may live on either TensorCore), so do it every step.
    zrow = jnp.zeros((1, 1, W + 2, Cf), jnp.bfloat16)
    zcol = jnp.zeros((1, Hp, 1, Cf), jnp.bfloat16)
    mid_ref[:, 0:1, LEFT - 1:LEFT + W + 1, :] = zrow
    mid_ref[:, Hp - 1:Hp, LEFT - 1:LEFT + W + 1, :] = zrow
    mid_ref[:, :, LEFT - 1:LEFT, :] = zcol
    mid_ref[:, :, LEFT + W:LEFT + W + 1, :] = zcol
    # Interior store lands at a sublane-aligned W offset (LEFT = 16 = bf16 tile).
    mid_ref[:, 1:H + 1, LEFT:LEFT + W, :] = y1.reshape(1, H, W, Cf)

    acc = _conv3x3_dysplit(mid_ref, w2_ref, H, W, LEFT, Co)     # (H*W, Co) f32
    y2_ref[...] = acc.reshape(1, H, W, Co)
    s = jnp.sum(acc, axis=0, keepdims=True)
    ss = jnp.sum(acc * acc, axis=0, keepdims=True)
    st2_ref[...] = jnp.concatenate([s, ss], axis=0).reshape(1, 2, Co)


def _bn2_add_relu_kernel(y2_ref, short_ref, sc2_ref, sh2_ref, out_ref):
    # bn2 folded FMA + shortcut add (f32) + ReLU; lane-dense unmasked store.
    _, H, W, Co = y2_ref.shape
    v = y2_ref[...].reshape(H * W, Co)
    s = short_ref[...].reshape(H * W, Co)
    out = jnp.maximum(v * sc2_ref[...] + sh2_ref[...] + s, 0.0)
    out_ref[...] = out.reshape(1, H, W, Co)


def _fold_bn(partial_stats, g, b, c_real, c_pad, m):
    """Fold training-mode BN into one FMA: bn(v) = v*scale + shift.

    partial_stats: (N, 2, c_pad) per-tile [sum, sumsq] in f32.
    """
    tot = jnp.sum(partial_stats, axis=0)                      # (2, c_pad)
    mean = tot[0] / m
    # Single-pass variance (clamped); fine at CIFAR scales, see review note.
    var = jnp.maximum(tot[1] / m - mean * mean, 0.0)
    inv = lax.rsqrt(var + BN_EPS)
    gp = jnp.pad(g.astype(jnp.float32), (0, c_pad - c_real))
    bp = jnp.pad(b.astype(jnp.float32), (0, c_pad - c_real))
    scale = inv * gp
    shift = bp - mean * scale
    return scale.reshape(1, c_pad), shift.reshape(1, c_pad)


def res_basic_block_forward(x_nchw, params, *, stride=1):
    """Mirrors ResBasicBlock.forward(x) for stride == 1 (training-mode BN)."""
    if stride != 1:
        # TODO(synk): strided conv1 + strided (::2) shortcut not implemented.
        raise NotImplementedError("stride != 1 not supported by this kernel")

    N, Cin, H, W = x_nchw.shape
    Cf = params["w1"].shape[0]       # filter_num
    Cpl = params["w2"].shape[0]      # planes
    Ci_p, Cf_p, Co_p = _round_up(Cin), _round_up(Cf), _round_up(Cpl)
    Hp, Wp = H + 2, W + 2
    M = N * H * W

    x_nhwc = jnp.transpose(x_nchw, (0, 2, 3, 1)).astype(jnp.float32)
    # Cast to bf16 BEFORE padding/patching (matmul operands are bf16 with f32
    # accumulation anyway); halves the x-side HBM->VMEM DMA.
    x_pad = jnp.pad(x_nhwc.astype(jnp.bfloat16),
                    ((0, 0), (1, 1), (1, 1), (0, Ci_p - Cin)))

    # OIHW -> (ky, kx, ci, co), channel-pad, pack as an im2col weight matrix with
    # rows in (dy, dx, ci) order so the kernel can slice K = 3*Cin blocks per dy.
    def pack_w(w, cin_p, cout_p):
        co, ci = w.shape[0], w.shape[1]
        wt = jnp.transpose(w, (2, 3, 1, 0)).astype(jnp.float32)
        wt = jnp.pad(wt, ((0, 0), (0, 0), (0, cin_p - ci), (0, cout_p - co)))
        return wt.reshape(9 * cin_p, cout_p).astype(jnp.bfloat16)

    w1 = pack_w(params["w1"], Ci_p, Cf_p)
    w2 = pack_w(params["w2"], Cf_p, Co_p)

    cparams = pltpu.CompilerParams(
        dimension_semantics=("parallel",),
        vmem_limit_bytes=_vmem_limit_bytes())

    # ---- pass 1: conv1 per image tile + per-tile BN1 partial sums ----
    y1_raw, st1 = pl.pallas_call(
        _conv1_kernel,
        out_shape=(jax.ShapeDtypeStruct((N, H, W, Cf_p), jnp.float32),
                   jax.ShapeDtypeStruct((N, 2, Cf_p), jnp.float32)),
        grid=(N,),
        in_specs=[pl.BlockSpec((1, Hp, Wp, Ci_p), lambda n: (n, 0, 0, 0)),
                  pl.BlockSpec((9 * Ci_p, Cf_p), lambda n: (0, 0))],
        out_specs=(pl.BlockSpec((1, H, W, Cf_p), lambda n: (n, 0, 0, 0)),
                   pl.BlockSpec((1, 2, Cf_p), lambda n: (n, 0, 0))),
        compiler_params=cparams,
    )(x_pad, w1)

    scale1, shift1 = _fold_bn(st1, params["g1"], params["b1"], Cf, Cf_p, M)

    # ---- pass 2: bn1 FMA + ReLU -> bf16 staging -> conv2 + BN2 partial sums ----
    y2_raw, st2 = pl.pallas_call(
        _conv2_kernel,
        out_shape=(jax.ShapeDtypeStruct((N, H, W, Co_p), jnp.float32),
                   jax.ShapeDtypeStruct((N, 2, Co_p), jnp.float32)),
        grid=(N,),
        in_specs=[pl.BlockSpec((1, H, W, Cf_p), lambda n: (n, 0, 0, 0)),
                  pl.BlockSpec((1, Cf_p), lambda n: (0, 0)),
                  pl.BlockSpec((1, Cf_p), lambda n: (0, 0)),
                  pl.BlockSpec((9 * Cf_p, Co_p), lambda n: (0, 0))],
        out_specs=(pl.BlockSpec((1, H, W, Co_p), lambda n: (n, 0, 0, 0)),
                   pl.BlockSpec((1, 2, Co_p), lambda n: (n, 0, 0))),
        scratch_shapes=[
            pltpu.VMEM((1, Hp, MID_LEFT_HALO + W + 1, Cf_p), jnp.bfloat16)],
        compiler_params=cparams,
    )(y1_raw, scale1, shift1, w2)

    scale2, shift2 = _fold_bn(st2, params["g2"], params["b2"], Cpl, Co_p, M)

    # ---- shortcut (stride == 1): identity or LambdaLayer zero channel padding ----
    if Cin == Cpl:
        short = x_nhwc
    else:
        p0 = (Cpl - Cin) // 2
        short = jnp.pad(x_nhwc, ((0, 0), (0, 0), (0, 0), (p0, Cpl - Cin - p0)))
    short = jnp.pad(short, ((0, 0), (0, 0), (0, 0), (0, Co_p - Cpl)))

    # ---- pass 3: bn2 FMA + shortcut add + ReLU ----
    out_nhwc = pl.pallas_call(
        _bn2_add_relu_kernel,
        out_shape=jax.ShapeDtypeStruct((N, H, W, Co_p), jnp.float32),
        grid=(N,),
        in_specs=[pl.BlockSpec((1, H, W, Co_p), lambda n: (n, 0, 0, 0)),
                  pl.BlockSpec((1, H, W, Co_p), lambda n: (n, 0, 0, 0)),
                  pl.BlockSpec((1, Co_p), lambda n: (0, 0)),
                  pl.BlockSpec((1, Co_p), lambda n: (0, 0))],
        out_specs=pl.BlockSpec((1, H, W, Co_p), lambda n: (n, 0, 0, 0)),
        compiler_params=cparams,
    )(y2_raw, short, scale2, shift2)

    return jnp.transpose(out_nhwc[..., :Cpl], (0, 3, 1, 2))


# ------------------------- pure-JAX references (NCHW) -------------------------
def _bn_train_ref(x, g, b):
    mean = jnp.mean(x, axis=(0, 2, 3), keepdims=True)
    var = jnp.mean((x - mean) ** 2, axis=(0, 2, 3), keepdims=True)
    return (x - mean) * lax.rsqrt(var + BN_EPS) * g[None, :, None, None] \
        + b[None, :, None, None]


def _reference(x_nchw, params, *, bf16_matmuls):
    dn = ("NCHW", "OIHW", "NCHW")

    def conv(a, w):
        if bf16_matmuls:  # mirror the kernel's MXU precision policy (bf16 in, f32 acc)
            return lax.conv_general_dilated(
                a.astype(jnp.bfloat16), w.astype(jnp.bfloat16), (1, 1),
                ((1, 1), (1, 1)), dimension_numbers=dn,
                preferred_element_type=jnp.float32)
        return lax.conv_general_dilated(a, w, (1, 1), ((1, 1), (1, 1)),
                                        dimension_numbers=dn,
                                        precision=lax.Precision.HIGHEST)

    out = conv(x_nchw, params["w1"])
    out = _bn_train_ref(out, params["g1"], params["b1"])
    out = jnp.maximum(out, 0.0)
    out = conv(out, params["w2"])
    out = _bn_train_ref(out, params["g2"], params["b2"])
    out = out + x_nchw                       # identity shortcut (inplanes == planes)
    return jnp.maximum(out, 0.0)


if __name__ == "__main__":
    N, Cin, H, W = 2, 4, 16, 16
    planes, filter_num, stride = 4, 4, 1

    key = jax.random.PRNGKey(0)
    ks = jax.random.split(key, 8)

    x = jax.random.normal(ks[0], (N, Cin, H, W), jnp.float32)
    params = {
        "w1": jax.random.normal(ks[1], (filter_num, Cin, 3, 3), jnp.float32) * 0.2,
        "w2": jax.random.normal(ks[2], (planes, filter_num, 3, 3), jnp.float32) * 0.2,
        "g1": 1.0 + 0.1 * jax.random.normal(ks[3], (filter_num,), jnp.float32),
        "b1": 0.1 * jax.random.normal(ks[4], (filter_num,), jnp.float32),
        "g2": 1.0 + 0.1 * jax.random.normal(ks[5], (planes,), jnp.float32),
        "b2": 0.1 * jax.random.normal(ks[6], (planes,), jnp.float32),
    }

    out = res_basic_block_forward(x, params, stride=stride)
    out = jax.block_until_ready(out)
    assert out.shape == (N, planes, H, W)

    # Tight check against a reference using the same bf16-operand / f32-accumulate
    # conv policy as the kernels.
    ref_bf16 = _reference(x, params, bf16_matmuls=True)
    err = jnp.max(jnp.abs(out - ref_bf16))
    assert jnp.allclose(out, ref_bf16, atol=2e-3, rtol=2e-3), \
        f"max abs diff vs bf16-policy reference: {err}"

    # Loose sanity check against the full-f32 reference (bounds bf16 MXU deviation).
    ref_f32 = _reference(x, params, bf16_matmuls=False)
    err32 = jnp.max(jnp.abs(out - ref_f32))
    assert jnp.allclose(out, ref_f32, atol=5e-2, rtol=5e-2), \
        f"max abs diff vs f32 reference: {err32}"

    print("KERNEL_OK")
</pallas_src>

<mosaic_0001>
module attributes {stable_mosaic.version = 11 : i64} {
  func.func @_conv1_kernel(%arg0: i32, %arg1: memref<1x18x18x128xbf16, #tpu.memory_space<vmem>>, %arg2: memref<1152x128xbf16, #tpu.memory_space<vmem>>, %arg3: memref<1x16x16x128xf32, #tpu.memory_space<vmem>>, %arg4: memref<1x2x128xf32, #tpu.memory_space<vmem>>) attributes {dimension_semantics = [#tpu.dimension_semantics<parallel>], iteration_bounds = array<i64: 2>, scalar_prefetch = 0 : i64, scratch_operands = 0 : i64, tpu.core_type = #tpu.core_type<tc>, window_params = [{transform_indices = @transform_0, window_bounds = array<i64: 1, 18, 18, 128>}, {pipeline_mode = #tpu.pipeline_mode<synchronous>, transform_indices = @transform_1, window_bounds = array<i64: 1152, 128>}, {transform_indices = @transform_2, window_bounds = array<i64: 1, 16, 16, 128>}, {transform_indices = @transform_3, window_bounds = array<i64: 1, 2, 128>}]} {
    %c0 = arith.constant 0 : index
    %c0_0 = arith.constant 0 : index
    %c0_1 = arith.constant 0 : index
    %c0_2 = arith.constant 0 : index
    %0 = vector.load %arg1[%c0, %c0_0, %c0_1, %c0_2] : memref<1x18x18x128xbf16, #tpu.memory_space<vmem>>, vector<1x18x16x128xbf16>
    %c0_3 = arith.constant 0 : index
    %c0_4 = arith.constant 0 : index
    %c1 = arith.constant 1 : index
    %c0_5 = arith.constant 0 : index
    %1 = vector.load %arg1[%c0_3, %c0_4, %c1, %c0_5] : memref<1x18x18x128xbf16, #tpu.memory_space<vmem>>, vector<1x18x16x128xbf16>
    %c0_6 = arith.constant 0 : index
    %c0_7 = arith.constant 0 : index
    %c2 = arith.constant 2 : index
    %c0_8 = arith.constant 0 : index
    %2 = vector.load %arg1[%c0_6, %c0_7, %c2, %c0_8] : memref<1x18x18x128xbf16, #tpu.memory_space<vmem>>, vector<1x18x16x128xbf16>
    %3 = tpu.concatenate %0, %1, %2 in 3 : vector<1x18x16x128xbf16>, vector<1x18x16x128xbf16>, vector<1x18x16x128xbf16> -> vector<1x18x16x384xbf16>
    %4 = vector.shape_cast %3 : vector<1x18x16x384xbf16> to vector<18x16x384xbf16>
    %cst = arith.constant 0.000000e+00 : f32
    %5 = vector.broadcast %cst : f32 to vector<256x128xf32>
    %6 = vector.extract_strided_slice %4 {offsets = [0, 0, 0], sizes = [16, 16, 384], strides = [1, 1, 1]} : vector<18x16x384xbf16> to vector<16x16x384xbf16>
    %7 = vector.shape_cast %6 : vector<16x16x384xbf16> to vector<256x384xbf16>
    %c0_9 = arith.constant 0 : index
    %c0_10 = arith.constant 0 : index
    %8 = vector.load %arg2[%c0_9, %c0_10] : memref<1152x128xbf16, #tpu.memory_space<vmem>>, vector<384x128xbf16>
    %cst_11 = arith.constant dense<0.000000e+00> : vector<256x128xf32>
    %9 = tpu.matmul %7, %8, %cst_11 {dimension_numbers = #tpu.dot_dimension_numbers<[1], [0], [0], [1], [0, 0, 1, 1], [], []>} : vector<256x384xbf16>, vector<384x128xbf16>, vector<256x128xf32> -> vector<256x128xf32>
    %10 = arith.addf %5, %9 : vector<256x128xf32>
    %11 = vector.extract_strided_slice %4 {offsets = [1, 0, 0], sizes = [16, 16, 384], strides = [1, 1, 1]} : vector<18x16x384xbf16> to vector<16x16x384xbf16>
    %12 = vector.shape_cast %11 : vector<16x16x384xbf16> to vector<256x384xbf16>
    %c384 = arith.constant 384 : index
    %c0_12 = arith.constant 0 : index
    %13 = vector.load %arg2[%c384, %c0_12] : memref<1152x128xbf16, #tpu.memory_space<vmem>>, vector<384x128xbf16>
    %cst_13 = arith.constant dense<0.000000e+00> : vector<256x128xf32>
    %14 = tpu.matmul %12, %13, %cst_13 {dimension_numbers = #tpu.dot_dimension_numbers<[1], [0], [0], [1], [0, 0, 1, 1], [], []>} : vector<256x384xbf16>, vector<384x128xbf16>, vector<256x128xf32> -> vector<256x128xf32>
    %15 = arith.addf %10, %14 : vector<256x128xf32>
    %16 = vector.extract_strided_slice %4 {offsets = [2, 0, 0], sizes = [16, 16, 384], strides = [1, 1, 1]} : vector<18x16x384xbf16> to vector<16x16x384xbf16>
    %17 = vector.shape_cast %16 : vector<16x16x384xbf16> to vector<256x384xbf16>
    %c768 = arith.constant 768 : index
    %c0_14 = arith.constant 0 : index
    %18 = vector.load %arg2[%c768, %c0_14] : memref<1152x128xbf16, #tpu.memory_space<vmem>>, vector<384x128xbf16>
    %cst_15 = arith.constant dense<0.000000e+00> : vector<256x128xf32>
    %19 = tpu.matmul %17, %18, %cst_15 {dimension_numbers = #tpu.dot_dimension_numbers<[1], [0], [0], [1], [0, 0, 1, 1], [], []>} : vector<256x384xbf16>, vector<384x128xbf16>, vector<256x128xf32> -> vector<256x128xf32>
    %20 = arith.addf %15, %19 : vector<256x128xf32>
    %21 = vector.shape_cast %20 : vector<256x128xf32> to vector<1x16x16x128xf32>
    %c0_16 = arith.constant 0 : index
    %c0_17 = arith.constant 0 : index
    %c0_18 = arith.constant 0 : index
    %c0_19 = arith.constant 0 : index
    %22 = vector.load %arg3[%c0_16, %c0_17, %c0_18, %c0_19] : memref<1x16x16x128xf32, #tpu.memory_space<vmem>>, vector<1x16x16x128xf32>
    tpu.vector_store %arg3[%c0_16, %c0_17, %c0_18, %c0_19], %21 {strides = array<i32>} : memref<1x16x16x128xf32, #tpu.memory_space<vmem>>, vector<1x16x16x128xf32>,
    %cst_20 = arith.constant dense<0.000000e+00> : vector<128xf32>
    %23 = vector.multi_reduction <add>, %20, %cst_20 [0] : vector<256x128xf32> to vector<128xf32>
    %24 = vector.shape_cast %23 : vector<128xf32> to vector<1x128xf32>
    %25 = arith.mulf %20, %20 : vector<256x128xf32>
    %cst_21 = arith.constant dense<0.000000e+00> : vector<128xf32>
    %26 = vector.multi_reduction <add>, %25, %cst_21 [0] : vector<256x128xf32> to vector<128xf32>
    %27 = vector.shape_cast %26 : vector<128xf32> to vector<1x128xf32>
    %28 = tpu.concatenate %24, %27 in 0 : vector<1x128xf32>, vector<1x128xf32> -> vector<2x128xf32>
    %29 = vector.shape_cast %28 : vector<2x128xf32> to vector<1x2x128xf32>
    %c0_22 = arith.constant 0 : index
    %c0_23 = arith.constant 0 : index
    %c0_24 = arith.constant 0 : index
    %30 = vector.load %arg4[%c0_22, %c0_23, %c0_24] : memref<1x2x128xf32, #tpu.memory_space<vmem>>, vector<1x2x128xf32>
    tpu.vector_store %arg4[%c0_22, %c0_23, %c0_24], %29 {strides = array<i32>} : memref<1x2x128xf32, #tpu.memory_space<vmem>>, vector<1x2x128xf32>,
    return
  }
  func.func @transform_0(%arg0: i32) -> (i32, i32, i32, i32) {
    %c0_i32 = arith.constant 0 : i32
    %c0_i32_0 = arith.constant 0 : i32
    %c0_i32_1 = arith.constant 0 : i32
    %c0_i32_2 = arith.constant 0 : i32
    return %arg0, %c0_i32, %c0_i32_0, %c0_i32_1 : i32, i32, i32, i32
  }
  func.func @transform_1(%arg0: i32) -> (i32, i32) {
    %c0_i32 = arith.constant 0 : i32
    %c0_i32_0 = arith.constant 0 : i32
    %c0_i32_1 = arith.constant 0 : i32
    return %c0_i32, %c0_i32_0 : i32, i32
  }
  func.func @transform_2(%arg0: i32) -> (i32, i32, i32, i32) {
    %c0_i32 = arith.constant 0 : i32
    %c0_i32_0 = arith.constant 0 : i32
    %c0_i32_1 = arith.constant 0 : i32
    %c0_i32_2 = arith.constant 0 : i32
    return %arg0, %c0_i32, %c0_i32_0, %c0_i32_1 : i32, i32, i32, i32
  }
  func.func @transform_3(%arg0: i32) -> (i32, i32, i32) {
    %c0_i32 = arith.constant 0 : i32
    %c0_i32_0 = arith.constant 0 : i32
    %c0_i32_1 = arith.constant 0 : i32
    return %arg0, %c0_i32, %c0_i32_0 : i32, i32, i32
  }
}

</mosaic_0001>

<bundles_post_ra>
// kernel: tpu_custom_call.1
= control target key start
LH: loop header
LB: loop body
LE: loop exit
PB: predicated region body
PF: predicated region fallthrough
CT: control target
= control target key end

     0   :  { %9 = vsyncpa [#allocation3], 0  ;;  %s5005_s0 = inlined_call_operand.vmem [shape: bf16[2,18,18,128], index: 0, kind: input, shape index: {}]   ;;  %s5006_s1 = inlined_call_operand.vmem [shape: bf16[1152,128], index: 1, kind: input, shape index: {}]   ;;  %s5007_s2 = inlined_call_operand.hbm [shape: f32[2,16,16,128], index: 2, kind: output, shape index: {0}]   ;;  %s5008_s3 = inlined_call_operand.hbm [shape: f32[2,2,128], index: 3, kind: output, shape index: {1}]  }
   0x1   :  { %11 = vsyncpa [#allocation3 + $0x1], 0 }
   0x2   :  { %12 = vsyncpa [#allocation5], 0 }
   0x3   :  { %14 = vsyncpa [#allocation5 + $0x1], 0  ;;  %s3782_s12 = smov 0   ;;  %s3784_s13 = smov 0  }
   0x4   :  { %s3786_s14 = smov 0   ;;  %s3788_s15 = smov 0  }
   0x5 LB: > { %s3803_s16 = sadd.s32 4294967295, %s3756_s15   ;;  %s2618_s17 = sadd.s32 4294967294, %s3756_s15   ;;  %s3756_s15 = sphi %s3788_s15, %s5043_s15   ;;  %s3752_s14 = sphi %s3786_s14, %s5042_s14   ;;  %s3748_s13 = sphi %s3784_s13, %s5041_s13   ;;  %s3744_s12 = sphi %s3782_s12, %s5040_s12  }
   0x6   : > { %s3807_s18 = sadd.s32 1, %s3756_s15   ;;  %s74_s19 = sadd.s32 1, %s3752_s14 }
   0x7   : > { %s71_s20 = ssub.s32 %s3756_s15, %s3807_s18  ;;  %p84_p0 = scmp.ne.s32.totalorder %s3752_s14, %s3748_s13 }
   0x8   : > { %p72_p1 = scmp.eq.s32.totalorder %s71_s20, 0  ;;  %p85_p2 = scmp.eq.s32.totalorder %s3803_s16, 1 }
   0x9   : > { %p90_p3 = scmp.ne.s32.totalorder %s3748_s13, %s3744_s12  ;;  %p91_p4 = scmp.eq.s32.totalorder %s2618_s17, 1 }
   0xa   : > { %s3818_s21 = scalar_select %p72_p1, %s3752_s14, %s74_s19  }
   0xb   : > { %p3820_p5 = por %p85_p2, %p84_p0  ;;  %p3824_p6 = por %p91_p4, %p90_p3 }
   0xc   : > { %p2621_p7 = scmp.ge.s32.totalorder %s3756_s15, 1  ;;  %p146_p8 = scmp.lt.s32.totalorder %s3756_s15, 3 }
   0xe   : > { %p147_p9 = pnand %p2621_p7, %p146_p8 }
  0x10   : > { %150 = sbr.rel (%p147_p9) target bundleno = 608 (0x260), region = 28 }
  0x17   : > { %v3534_v0 = vld [vmem:[%s5006_s1 + $0x100] sm:$0xff]   ;;  %v3537_v3 = vld [vmem:[%s5006_s1 + $0x108] sm:$0xff]   ;;  %v3540_v6 = vld [vmem:[%s5006_s1 + $0x110] sm:$0xff]   ;;  %p175_p10 = scmp.lt.s32.totalorder %s3803_s16, 1  ;;  %vm704_vm0 = vcmask 1046528   ;;  %s2758_s10 = sshll.u32 %s3803_s16, 12 }
  0x18   : > { %v3836_v1 = vld [vmem:[%s5006_s1 + $0x140] sm:$0xff]   ;;  %2759 = vmatprep.subr.bf16.mxu0 %v3534_v0  ;;  %v3849_v4 = vld [vmem:[%s5006_s1 + $0x148] sm:$0xff]   ;;  %v3861_v7 = vld [vmem:[%s5006_s1 + $0x150] sm:$0xff]   ;;  %vm415_vm1 = vsmask.f32 7424  ;;  %s3758_s26 = smov [#allocation2]  }
  0x19   : > { %v3536_v2 = vld [vmem:[%s5006_s1 + $0xc0] sm:$0xff]   ;;  %3311 = vmatprep.subr.bf16.mxu1 %v3836_v1  ;;  %v3539_v5 = vld [vmem:[%s5006_s1 + $0xc8] sm:$0xff]   ;;  %v3542_v8 = vld [vmem:[%s5006_s1 + $0xd0] sm:$0xff]   ;;  %s176_s7 = scalar_select %p175_p10, %s3803_s16, 1 }
  0x1a   : > { %2760 = vmatpush3.bf16.msra.mxu0 %v3536_v2  ;;  %3319 = vmatpush3.bf16.msra.mxu1 %v3836_v1  ;;  %v3543_v9 = vld [vmem:[%s5006_s1 + $0x118] sm:$0xff]   ;;  %v3546_v12 = vld [vmem:[%s5006_s1 + $0x120] sm:$0xff]   ;;  %v3549_v15 = vld [vmem:[%s5006_s1 + $0x128] sm:$0xff]   ;;  %s3666_s27 = sshll.u32 %s3758_s26, 4  ;;  %s3667_s27 = int_to_ptr.vmem [resolvable:$false] %s3666_s27 }
  0x1b   : > { %2761 = vmatprep.subr.bf16.mxu0 %v3537_v3  ;;  %3312 = vmatprep.subr.bf16.mxu1 %v3849_v4  ;;  %v3875_v10 = vld [vmem:[%s5006_s1 + $0x158] sm:$0xff]   ;;  %v3888_v13 = vld [vmem:[%s5006_s1 + $0x160] sm:$0xff]   ;;  %v3902_v16 = vld [vmem:[%s5006_s1 + $0x168] sm:$0xff]   ;;  %s3487_s20 = smul.u32 216, %s176_s7  ;;  %s3668_s28 = scalar_lea.vmem %s3667_s27, 8192 }
  0x1c   : > { %v3545_v11 = vld [vmem:[%s5006_s1 + $0xd8] sm:$0xff]   ;;  %v3548_v14 = vld [vmem:[%s5006_s1 + $0xe0] sm:$0xff]   ;;  %v3551_v17 = vld [vmem:[%s5006_s1 + $0xe8] sm:$0xff]  }
  0x1d   : > { %v3552_v18 = vld [vmem:[%s5006_s1 + $0x130] sm:$0xff]   ;;  %s3920_s5 = scalar_lea.vmem %s5005_s0, %s3487_s20  ;;  %v3555_v23 = vld [vmem:[%s5006_s1 + $0x138] sm:$0xff]   ;;  %v3566_v35 = vld [vmem:[%s5006_s1 + $0x40] sm:$0xff]   ;;  %s4927_s20 = scalar_lea.hbm %s5007_s2, %s2758_s10 }
  0x1e   : > { %2762 = vmatpush3.bf16.msra.mxu0 %v3539_v5  ;;  %3320 = vmatpush3.bf16.msra.mxu1 %v3849_v4  ;;  %v3915_v19 = vld [vmem:[%s5006_s1 + $0x170] sm:$0xff]   ;;  %v183_v21 = vld [vmem:[%s3920_s5 + $0xc] sm:$0xf]  ;;  %v3935_v24 = vld [vmem:[%s5006_s1 + $0x178] sm:$0xff]  }
  0x1f   : > { %2763 = vmatprep.subr.bf16.mxu0 %v3540_v6  ;;  %3313 = vmatprep.subr.bf16.mxu1 %v3861_v7  ;;  %v3554_v20 = vld [vmem:[%s5006_s1 + $0xf0] sm:$0xff]   ;;  %v3557_v28 = vld [vmem:[%s5006_s1 + $0xf8] sm:$0xff]   ;;  %v244_v32 = vld [vmem:[%s3920_s5 + $0x6c] sm:$0xe] }
  0x20   : > { %v184_v22 = vld [vmem:[%s3920_s5 + $0x10] sm:$0xf]  ;;  %v3559_v26 = vld [vmem:[%s3920_s5 + $0x14] ss:$0 sps:$4 sm:$0x11]   ;;  %v3567_v45 = vld [vmem:[%s5006_s1] sm:$0xff]  }
  0x21   : > { %v3937_v25 = vcombine.low %v183_v21, %v184_v22  ;;  %v3941_v27 = vld [vmem:[%s3920_s5 + $0x70] sm:$0xf]  ;;  %v436_v31 = vshll.u32 %v3559_v26, 16  ;;  %v3951_v33 = vld [vmem:[%s3920_s5 + $0x74] ss:$0 sps:$4 sm:$0x11]  }
  0x22   : > { %2764 = vmatpush3.bf16.msra.mxu0 %v3542_v8  ;;  %3321 = vmatpush3.bf16.msra.mxu1 %v3861_v7  ;;  %v2670_v34 = vcombine.low %v244_v32, %v3941_v27  ;;  %v3959_v38 = vld [vmem:[%s3920_s5 + $0x7c] sm:$0xf]  ;;  %v733_v40 = vrot.slane %v3951_v33, 1  ;;  %v245_v41 = vld [vmem:[%s3920_s5 + $0x78] sm:$0xe]  ;;  %v3568_v47 = vld [vmem:[%s5006_s1 + $0x48] sm:$0xff]  }
  0x23   : > { %2765 = vmatprep.subr.bf16.mxu0 %v3543_v9  ;;  %3314 = vmatprep.subr.bf16.mxu1 %v3875_v10  ;;  %v429_v29 = vshrl.u32 %v3937_v25, 16  ;;  %v431_v30 = vshll.u32 %v3937_v25, 16  ;;  %v438_v37 = vrot.slane %v436_v31, 1  ;;  %v3964_v43 = vld [vmem:[%s3920_s5 + $0x80] ss:$0 sps:$4 sm:$0x11]   ;;  %v2671_v44 = vcombine.low %v245_v41, %v3959_v38 }
  0x24   : > { %v732_v39 = vrot.slane %v2670_v34, 1  ;;  %v736_v50 = vrot.slane %v3964_v43, 1  ;;  %v185_v51 = vld [vmem:[%s3920_s5 + $0x18] sm:$0xf]  ;;  %v3986_v52 = vld [vmem:[%s3920_s5 + $0x1c] sm:$0xf] }
  0x25   : > { %v433_v36 = vrot.slane %v431_v30, 1  ;;  %v735_v49 = vrot.slane %v2671_v44, 1  ;;  %v3993_v54 = vcombine.low %v185_v51, %v3986_v52  ;;  %v3996_v55 = vld [vmem:[%s3920_s5 + $0x20] ss:$0 sps:$4 sm:$0x11]   ;;  %v3569_v57 = vld [vmem:[%s5006_s1 + $0x8] sm:$0xff]  }
  0x26   : > { %2766 = vmatpush3.bf16.msra.mxu0 %v3545_v11  ;;  %3322 = vmatpush3.bf16.msra.mxu1 %v3875_v10  ;;  %v3972_v46 = vsel %vm704_vm0, %v732_v39, %v733_v40  ;;  %v4001_v56 = vld [vmem:[%s3920_s5 + $0x88] sm:$0xf]  ;;  %v448_v60 = vshll.u32 %v3996_v55, 16  ;;  %v246_v61 = vld [vmem:[%s3920_s5 + $0x84] sm:$0xe]  ;;  %v3578_v0 = vld [vmem:[%s5006_s1 + $0x50] sm:$0xff]  }
  0x27   : > { %2767 = vmatprep.subr.bf16.mxu0 %v3546_v12  ;;  %3315 = vmatprep.subr.bf16.mxu1 %v3888_v13  ;;  %v434_v42 = vor.u32 %v433_v36, %v429_v29  ;;  %v3990_v53 = vsel %vm704_vm0, %v735_v49, %v736_v50  ;;  %v441_v58 = vshrl.u32 %v3993_v54, 16  ;;  %v443_v59 = vshll.u32 %v3993_v54, 16  ;;  %v4012_v62 = vld [vmem:[%s3920_s5 + $0x8c] ss:$0 sps:$4 sm:$0x11]   ;;  %v3579_v5 = vld [vmem:[%s5006_s1 + $0x10] sm:$0xff]  }
  0x28   : > { %3199 = vmatprep.mubr.bf16.mxu1 %v3972_v46  ;;  %5024 = vst [vmem:[#allocation8_spill] sm:$0xff] %v3990_v53  ;;  %v2672_v63 = vcombine.low %v246_v61, %v4001_v56  ;;  %v450_v2 = vrot.slane %v448_v60, 1  ;;  %v4019_v3 = vld [vmem:[%s3920_s5 + $0x94] sm:$0xf]  ;;  %v739_v8 = vrot.slane %v4012_v62, 1  ;;  %v3581_v26 = vld [vmem:[%s5006_s1 + $0x18] sm:$0xff]  }
  0x29   : > { %v3978_v48 = vsel %vm415_vm1, %v434_v42, %v438_v37  ;;  %v247_v9 = vld [vmem:[%s3920_s5 + $0x90] sm:$0xe]  ;;  %v4028_v12 = vld [vmem:[%s3920_s5 + $0x98] ss:$0 sps:$4 sm:$0x11]   ;;  %v3590_v30 = vld [vmem:[%s5006_s1 + $0x60] sm:$0xff]  }
  0x2a   : > { %2768 = vmatpush3.bf16.msra.mxu0 %v3548_v14  ;;  %3323 = vmatpush3.bf16.msra.mxu1 %v3888_v13  ;;  %v738_v6 = vrot.slane %v2672_v63, 1  ;;  %v2673_v14 = vcombine.low %v247_v9, %v4019_v3  ;;  %v187_v21 = vld [vmem:[%s3920_s5 + $0x24] sm:$0xf]  ;;  %v4046_v22 = vld [vmem:[%s3920_s5 + $0x28] sm:$0xf] }
  0x2b   : > { %2769 = vmatprep.subr.bf16.mxu0 %v3549_v15  ;;  %3316 = vmatprep.subr.bf16.mxu1 %v3902_v16  ;;  %v3580_v15 = vld [vmem:[%s5006_s1 + $0x58] sm:$0xff]   ;;  %v4060_v29 = vld [vmem:[%s3920_s5 + $0x2c] ss:$0 sps:$4 sm:$0x11]   ;;  %v3591_v39 = vld [vmem:[%s5006_s1 + $0x20] sm:$0xff]  }
  0x2c   : > { %1049 = vmatprep.mubr.bf16.mxu0 %v3978_v48  ;;  %v460_v34 = vshll.u32 %v4060_v29, 16  ;;  %v4075_v36 = vld [vmem:[%s3920_s5 + $0xa4] ss:$0 sps:$4 sm:$0x11]   ;;  %v3592_v40 = vld [vmem:[%s5006_s1 + $0x68] sm:$0xff]  }
  0x2d   : > { %v4086_v44 = vld [vmem:[%s3920_s5 + $0xac] sm:$0xf]  ;;  %v249_v49 = vld [vmem:[%s3920_s5 + $0xa8] sm:$0xe]  ;;  %v189_v63 = vld [vmem:[%s3920_s5 + $0x30] sm:$0xf] }
  0x2e   : > { %2770 = vmatpush3.bf16.msra.mxu0 %v3551_v17  ;;  %3324 = vmatpush3.bf16.msra.mxu1 %v3902_v16  ;;  %v4036_v17 = vsel %vm704_vm0, %v738_v6, %v739_v8  ;;  %v462_v42 = vrot.slane %v460_v34, 1  ;;  %v4092_v51 = vld [vmem:[%s3920_s5 + $0xb0] ss:$0 sps:$4 sm:$0x11]   ;;  %v4128_v6 = vld [vmem:[%s3920_s5 + $0xb8] sm:$0xf] }
  0x2f   : > { %2771 = vmatprep.subr.bf16.mxu0 %v3552_v18  ;;  %3317 = vmatprep.subr.bf16.mxu1 %v3915_v19  ;;  %5025 = vst [vmem:[#allocation9_spill] sm:$0xff] %v4036_v17  ;;  %v748_v61 = vrot.slane %v4092_v51, 1  ;;  %v251_v34 = vld [vmem:[%s3920_s5 + $0xc0] sm:$0xe] }
  0x32   : > { %2772 = vmatpush3.bf16.msra.mxu0 %v3554_v20  ;;  %3325 = vmatpush3.bf16.msra.mxu1 %v3915_v19  ;;  %v742_v20 = vrot.slane %v4028_v12, 1 }
  0x33   : > { %2773 = vmatprep.subr.bf16.mxu0 %v3555_v23  ;;  %3318 = vmatprep.subr.bf16.mxu1 %v3935_v24 }
  0x36   : > { %2774 = vmatpush3.bf16.msra.mxu0 %v3557_v28  ;;  %3326 = vmatpush3.bf16.msra.mxu1 %v3935_v24  ;;  %v4057_v28 = vcombine.low %v187_v21, %v4046_v22 }
  0x37   : > { %3167 = vmatprep.subr.bf16.mxu0 %v3836_v1  ;;  %2895 = vmatprep.subr.bf16.mxu1 %v3566_v35  ;;  %v248_v35 = vld [vmem:[%s3920_s5 + $0x9c] sm:$0xe] }
  0x38   : > { %v453_v31 = vshrl.u32 %v4057_v28, 16  ;;  %v455_v32 = vshll.u32 %v4057_v28, 16 }
  0x39   : > { %1050 = vmatmul.mubr.bf16.vlgmr.msra.gmra.mrb[0].mxu0 %v3937_v25  ;;  %3200 = vmatmul.mubr.bf16.vlgmr.msra.gmra.mrb[0].mxu1 %v3990_v53 }
  0x3a   : > { %3168 = vmatpush3.bf16.msra.mxu0 %v3836_v1  ;;  %2896 = vmatpush3.bf16.msra.mxu1 %v3567_v45  ;;  %v445_v1 = vrot.slane %v443_v59, 1  ;;  %v457_v41 = vrot.slane %v455_v32, 1 }
  0x3b   : > { %3169 = vmatprep.subr.bf16.mxu0 %v3849_v4  ;;  %2897 = vmatprep.subr.bf16.mxu1 %v3568_v47  ;;  %v745_v47 = vrot.slane %v4075_v36, 1 }
  0x3c   : > { %v446_v11 = vor.u32 %v445_v1, %v441_v58  ;;  %3203 = vmatprep.mubr.bf16.mxu1 %v4036_v17  ;;  %v458_v50 = vor.u32 %v457_v41, %v453_v31 }
  0x3e   : > { %3170 = vmatpush3.bf16.msra.mxu0 %v3849_v4  ;;  %2898 = vmatpush3.bf16.msra.mxu1 %v3569_v57  ;;  %v4039_v18 = vsel %vm415_vm1, %v446_v11, %v450_v2  ;;  %v741_v4 = vrot.slane %v2673_v14, 1  ;;  %v2675_v57 = vcombine.low %v249_v49, %v4086_v44  ;;  %v4103_v59 = vsel %vm415_vm1, %v458_v50, %v462_v42  ;;  %v4120_v2 = vld [vmem:[%s3920_s5 + $0x38] ss:$0 sps:$4 sm:$0x11]   ;;  %v250_v14 = vld [vmem:[%s3920_s5 + $0xb4] sm:$0xe] }
  0x3f   : > { %3171 = vmatprep.subr.bf16.mxu0 %v3861_v7  ;;  %2899 = vmatprep.subr.bf16.mxu1 %v3578_v0  ;;  %v4110_v0 = vld [vmem:[%s3920_s5 + $0x34] sm:$0xf]  ;;  %v472_v11 = vshll.u32 %v4120_v2, 16  ;;  %v4171_v49 = vld [vmem:[%s3920_s5 + $0x40] sm:$0xf] }
  0x40   : > { %1057 = vmatprep.mubr.bf16.mxu0 %v4039_v18  ;;  %v4051_v23 = vsel %vm704_vm0, %v741_v4, %v742_v20  ;;  %v747_v60 = vrot.slane %v2675_v57, 1  ;;  %v4117_v1 = vcombine.low %v189_v63, %v4110_v0  ;;  %v4140_v4 = vld [vmem:[%s3920_s5 + $0xbc] ss:$0 sps:$4 sm:$0x11]  }
  0x41   : > { %1058 = vmatmul.mubr.bf16.gmra.mrb[4].mxu0 %v3993_v54  ;;  %5026 = vst [vmem:[#allocation10_spill] sm:$0xff] %v4051_v23  ;;  %3204 = vmatmul.mubr.bf16.gmra.mrb[4].mxu1 %v4051_v23  ;;  %v3604_v20 = vld [vmem:[%s5006_s1 + $0x78] sm:$0xff]   ;;  %v751_v32 = vrot.slane %v4140_v4, 1 }
  0x42   : > { %3172 = vmatpush3.bf16.msra.mxu0 %v3861_v7  ;;  %2900 = vmatpush3.bf16.msra.mxu1 %v3579_v5  ;;  %v4064_v7 = vld [vmem:[%s3920_s5 + $0xa0] sm:$0xf]  ;;  %v3602_v5 = vld [vmem:[%s5006_s1 + $0x70] sm:$0xff]   ;;  %v465_v8 = vshrl.u32 %v4117_v1, 16  ;;  %v467_v9 = vshll.u32 %v4117_v1, 16 }
  0x43   : > { %2901 = vmatprep.subr.bf16.mxu1 %v3580_v15  ;;  %3173 = vmatprep.subr.bf16.mxu0 %v3875_v10  ;;  %v2674_v37 = vcombine.low %v248_v35, %v4064_v7  ;;  %v3603_v15 = vld [vmem:[%s5006_s1 + $0x30] sm:$0xff]  }
  0x44   : > { %1065 = vmatprep.mubr.bf16.mxu0 %v4103_v59  ;;  %v469_v21 = vrot.slane %v467_v9, 1 }
  0x45   : > { %v744_v45 = vrot.slane %v2674_v37, 1  ;;  %v4153_v37 = vld [vmem:[%s3920_s5 + $0xc8] ss:$0 sps:$4 sm:$0x11]  }
  0x46   : > { %3174 = vmatpush3.bf16.msra.mxu0 %v3875_v10  ;;  %2902 = vmatpush3.bf16.msra.mxu1 %v3581_v26  ;;  %v3593_v10 = vld [vmem:[%s5006_s1 + $0x28] sm:$0xff]   ;;  %v474_v26 = vrot.slane %v472_v11, 1  ;;  %v470_v35 = vor.u32 %v469_v21, %v465_v8 }
  0x47   : > { %3175 = vmatprep.subr.bf16.mxu0 %v3888_v13  ;;  %2903 = vmatprep.subr.bf16.mxu1 %v3590_v30  ;;  %v4099_v58 = vsel %vm704_vm0, %v744_v45, %v745_v47  ;;  %v4147_v30 = vld [vmem:[%s3920_s5 + $0xc4] sm:$0xf]  ;;  %v754_v45 = vrot.slane %v4153_v37, 1  ;;  %v191_v47 = vld [vmem:[%s3920_s5 + $0x3c] sm:$0xf] }
  0x48   : > { %5027 = vst [vmem:[#allocation11_spill] sm:$0xff] %v4099_v58  ;;  %3207 = vmatprep.mubr.bf16.mxu1 %v4099_v58  ;;  %v4179_v57 = vcombine.low %v191_v47, %v4171_v49  ;;  %v4197_v11 = vld [vmem:[%s3920_s5 + $0x8] ss:$0 sps:$4 sm:$0x11]   ;;  %v199_v58 = vld [vmem:[%s3920_s5 + $0x6c] sm:$0xf] }
  0x49   : > { %1066 = vmatmul.mubr.bf16.gmra.mrb[8].mxu0 %v4057_v28 }
  0x4a   : > { %3176 = vmatpush3.bf16.msra.mxu0 %v3888_v13  ;;  %2904 = vmatpush3.bf16.msra.mxu1 %v3591_v39  ;;  %v4114_v13 = vsel %vm704_vm0, %v747_v60, %v748_v61  ;;  %v2677_v39 = vcombine.low %v251_v34, %v4147_v30  ;;  %v3610_v60 = vld [vmem:[%s5006_s1 + $0x80] sm:$0xff]   ;;  %v477_v63 = vshrl.u32 %v4179_v57, 16  ;;  %v4208_v34 = vld [vmem:[%s3920_s5 + $0x50] ss:$0 sps:$4 sm:$0x11]  }
  0x4b   : > { %2905 = vmatprep.subr.bf16.mxu1 %v3592_v40  ;;  %5028 = vst [vmem:[#allocation12_spill] sm:$0xff] %v4114_v13  ;;  %3177 = vmatprep.subr.bf16.mxu0 %v3902_v16  ;;  %v3605_v40 = vld [vmem:[%s5006_s1 + $0x38] sm:$0xff]   ;;  %v4190_v61 = vld [vmem:[%s3920_s5 + $0x4] sm:$0xf] }
  0x4c   : > { %3208 = vmatmul.mubr.bf16.gmra.mrb[8].mxu1 %v4114_v13  ;;  %v753_v42 = vrot.slane %v2677_v39, 1 }
  0x4e   : > { %3178 = vmatpush3.bf16.msra.mxu0 %v3902_v16  ;;  %2906 = vmatpush3.bf16.msra.mxu1 %v3593_v10  ;;  %v2676_v16 = vcombine.low %v250_v14, %v4128_v6  ;;  %v4176_v50 = vsel %vm704_vm0, %v753_v42, %v754_v45  ;;  %v4182_v10 = vld [vmem:[%s3920_s5 + $0x44] ss:$0 sps:$4 sm:$0x11]   ;;  %v193_v14 = vld [vmem:[%s3920_s5 + $0x48] sm:$0xf] }
  0x4f   : > { %3179 = vmatprep.subr.bf16.mxu0 %v3915_v19  ;;  %2907 = vmatprep.subr.bf16.mxu1 %v3602_v5  ;;  %5030 = vst [vmem:[#allocation14_spill] sm:$0xff] %v4176_v50  ;;  %v479_v5 = vshll.u32 %v4179_v57, 16  ;;  %v484_v8 = vshll.u32 %v4182_v10, 16  ;;  %v4212_v42 = vld [vmem:[%s3920_s5 + $0x58] sm:$0xf] }
  0x50   : > { %v750_v31 = vrot.slane %v2676_v16, 1 }
  0x51   : > { %v486_v16 = vrot.slane %v484_v8, 1 }
  0x52   : > { %3180 = vmatpush3.bf16.msra.mxu0 %v3915_v19  ;;  %2908 = vmatpush3.bf16.msra.mxu1 %v3603_v15  ;;  %v4161_v41 = vsel %vm704_vm0, %v750_v31, %v751_v32  ;;  %v4164_v19 = vsel %vm415_vm1, %v470_v35, %v474_v26  ;;  %v481_v15 = vrot.slane %v479_v5, 1  ;;  %v4201_v26 = vld [vmem:[%s3920_s5 + $0x4c] sm:$0xf]  ;;  %v424_v31 = vshll.u32 %v4197_v11, 16 }
  0x53   : > { %3181 = vmatprep.subr.bf16.mxu0 %v3935_v24  ;;  %5029 = vst [vmem:[#allocation13_spill] sm:$0xff] %v4161_v41  ;;  %2909 = vmatprep.subr.bf16.mxu1 %v3604_v20  ;;  %v4205_v32 = vcombine.low %v193_v14, %v4201_v26  ;;  %v496_v5 = vshll.u32 %v4208_v34, 16 }
  0x54   : > { %3211 = vmatprep.mubr.bf16.mxu1 %v4161_v41  ;;  %1073 = vmatprep.mubr.bf16.mxu0 %v4164_v19  ;;  %v482_v35 = vor.u32 %v481_v15, %v477_v63  ;;  %v426_v45 = vrot.slane %v424_v31, 1  ;;  %v4224_v63 = vld [vmem:[%s3920_s5 + $0x5c] ss:$0 sps:$4 sm:$0x11]   ;;  %v197_v31 = vld [vmem:[%s3920_s5 + $0x60] sm:$0xf] }
  0x55   : > { %1074 = vmatmul.mubr.bf16.gmra.mrb[12].mxu0 %v4117_v1  ;;  %3212 = vmatmul.mubr.bf16.gmra.mrb[12].mxu1 %v4176_v50  ;;  %v489_v47 = vshrl.u32 %v4205_v32, 16 }
  0x56   : > { %3182 = vmatpush3.bf16.msra.mxu0 %v3935_v24  ;;  %2910 = vmatpush3.bf16.msra.mxu1 %v3605_v40  ;;  %v181_v24 = vld [vmem:[%s3920_s5] sm:$0xf]  ;;  %v195_v40 = vld [vmem:[%s3920_s5 + $0x54] sm:$0xf]  ;;  %v4218_v8 = vsel %vm415_vm1, %v482_v35, %v486_v16  ;;  %v508_v35 = vshll.u32 %v4224_v63, 16 }
  0x57   : > { %v2625_v9 = vcombine.low %v181_v24, %v4190_v61  ;;  %3215 = vmatprep.subr.bf16.mxu1 %v3610_v60  ;;  %v491_v24 = vshll.u32 %v4205_v32, 16  ;;  %v4221_v50 = vcombine.low %v195_v40, %v4212_v42  ;;  %1081 = vmatprep.mubr.bf16.mxu0 %v4218_v8  ;;  %v4237_v40 = vld [vmem:[%s3920_s5 + $0x64] sm:$0xf] }
  0x58   : > { %v510_v13 = vrot.slane %v508_v35, 1  ;;  %v532_v35 = vshll.u32 %v3951_v33, 16 }
  0x59   : > { %v417_v20 = vshrl.u32 %v2625_v9, 16  ;;  %v419_v21 = vshll.u32 %v2625_v9, 16  ;;  %v493_v15 = vrot.slane %v491_v24, 1  ;;  %v501_v16 = vshrl.u32 %v4221_v50, 16 }
  0x5a   : > { %v534_v33 = vrot.slane %v532_v35, 1 }
  0x5b   : > { %v421_v39 = vrot.slane %v419_v21, 1  ;;  %v498_v21 = vrot.slane %v496_v5, 1  ;;  %v494_v24 = vor.u32 %v493_v15, %v489_v47  ;;  %v4240_v5 = vcombine.low %v197_v31, %v4237_v40  ;;  %v3619_v31 = vld [vmem:[%s5006_s1 + $0x98] sm:$0xff]  }
  0x5d   : > { %v422_v14 = vor.u32 %v421_v39, %v417_v20  ;;  %1082 = vmatmul.mubr.bf16.gmra.mrb[16].mxu0 %v4179_v57  ;;  %v503_v20 = vshll.u32 %v4221_v50, 16  ;;  %v3615_v39 = vld [vmem:[%s5006_s1 + $0x88] sm:$0xff]   ;;  %v4247_v23 = vsel %vm415_vm1, %v494_v24, %v498_v21  ;;  %v515_v17 = vshll.u32 %v4240_v5, 16 }
  0x5e   : > { %1089 = vmatprep.mubr.bf16.mxu0 %v4247_v23  ;;  %v513_v47 = vshrl.u32 %v4240_v5, 16 }
  0x5f   : > { %v427_v41 = vsel %vm415_vm1, %v422_v14, %v426_v45  ;;  %v4243_v45 = vld [vmem:[%s3920_s5 + $0x68] ss:$0 sps:$4 sm:$0x11]   ;;  %v505_v14 = vrot.slane %v503_v20, 1  ;;  %v517_v21 = vrot.slane %v515_v17, 1  ;;  %v3625_v20 = vld [vmem:[%s5006_s1 + $0x1c0] sm:$0xff]  }
  0x60   : > { %1515 = vmatprep.mubr.bf16.mxu1 %v427_v41  ;;  %3031 = vmatprep.subr.bf16.mxu0 %v3625_v20  ;;  %v3624_v20 = vld [vmem:[%s5006_s1 + $0xb0] sm:$0xff]  }
  0x61   : > { %1516 = vmatmul.mubr.bf16.vlgmr.msra.gmra.mrb[16].mxu1 %v2625_v9  ;;  %v506_v41 = vor.u32 %v505_v14, %v501_v16  ;;  %v3618_v9 = vld [vmem:[%s5006_s1 + $0x90] sm:$0xff]   ;;  %v201_v16 = vld [vmem:[%s3920_s5 + $0x78] sm:$0xf] }
  0x62   : > { %3216 = vmatpush3.bf16.msra.mxu1 %v3610_v60  ;;  %1523 = vmatprep.mubr.bf16.mxu1 %v3978_v48  ;;  %v4257_v60 = vcombine.low %v199_v58, %v3941_v27  ;;  %v520_v48 = vshll.u32 %v4243_v45, 16  ;;  %v518_v27 = vor.u32 %v517_v21, %v513_v47  ;;  %v238_v21 = vld [vmem:[%s3920_s5 + $0x24] sm:$0xe] }
  0x63   : > { %3217 = vmatprep.subr.bf16.mxu1 %v3615_v39  ;;  %v4260_v15 = vsel %vm415_vm1, %v506_v41, %v510_v13  ;;  %v3620_v13 = vld [vmem:[%s5006_s1 + $0xa0] sm:$0xff]   ;;  %v237_v41 = vld [vmem:[%s3920_s5 + $0x18] sm:$0xe]  ;;  %v2664_v35 = vcombine.low %v238_v21, %v4046_v22 }
  0x64   : > { %v522_v58 = vrot.slane %v520_v48, 1  ;;  %v527_v17 = vshll.u32 %v4257_v60, 16  ;;  %v525_v24 = vshrl.u32 %v4257_v60, 16  ;;  %v203_v48 = vld [vmem:[%s3920_s5 + $0x84] sm:$0xf] }
  0x65   : > { %1090 = vmatmul.mubr.bf16.gmra.mrb[20].mxu0 %v4205_v32 }
  0x66   : > { %3218 = vmatpush3.bf16.msra.mxu1 %v3615_v39  ;;  %1097 = vmatprep.mubr.bf16.mxu0 %v4260_v15  ;;  %v4283_v39 = vsel %vm415_vm1, %v518_v27, %v522_v58  ;;  %v529_v14 = vrot.slane %v527_v17, 1  ;;  %v2663_v27 = vcombine.low %v237_v41, %v3986_v52  ;;  %v712_v58 = vrot.slane %v3996_v55, 1  ;;  %v239_v17 = vld [vmem:[%s3920_s5 + $0x30] sm:$0xe] }
  0x67   : > { %3219 = vmatprep.subr.bf16.mxu1 %v3618_v9  ;;  %v2665_v52 = vcombine.low %v239_v17, %v4110_v0  ;;  %v718_v55 = vrot.slane %v4120_v2, 1  ;;  %v714_v41 = vrot.slane %v2664_v35, 1  ;;  %v240_v0 = vld [vmem:[%s3920_s5 + $0x3c] sm:$0xe]  ;;  %v241_v2 = vld [vmem:[%s3920_s5 + $0x48] sm:$0xe] }
  0x69   : > { %1524 = vmatmul.mubr.bf16.gmra.mrb[20].mxu1 %v3937_v25  ;;  %v4279_v25 = vcombine.low %v201_v16, %v3959_v38  ;;  %v3621_v38 = vld [vmem:[%s5006_s1 + $0xa8] sm:$0xff]   ;;  %v544_v16 = vshll.u32 %v3964_v43, 16  ;;  %v711_v43 = vrot.slane %v2663_v27, 1  ;;  %v717_v21 = vrot.slane %v2665_v52, 1  ;;  %v242_v52 = vld [vmem:[%s3920_s5 + $0x54] sm:$0xe] }
  0x6a   : > { %1531 = vmatprep.mubr.bf16.mxu1 %v4039_v18  ;;  %3220 = vmatpush3.bf16.msra.mxu1 %v3618_v9 }
  0x6b   : > { %3221 = vmatprep.subr.bf16.mxu1 %v3619_v31  ;;  %v537_v9 = vshrl.u32 %v4279_v25, 16  ;;  %v539_v47 = vshll.u32 %v4279_v25, 16  ;;  %v4316_v22 = vsel %vm704_vm0, %v711_v43, %v712_v58  ;;  %v546_v17 = vrot.slane %v544_v16, 1 }
  0x6c   : > { %v2668_v16 = vcombine.low %v242_v52, %v4212_v42 }
  0x6d   : > { %1098 = vmatmul.mubr.bf16.gmra.mrb[24].mxu0 %v4221_v50 }
  0x6e   : > { %3222 = vmatpush3.bf16.msra.mxu1 %v3619_v31  ;;  %1105 = vmatprep.mubr.bf16.mxu0 %v4283_v39  ;;  %v530_v31 = vor.u32 %v529_v14, %v525_v24  ;;  %v715_v24 = vrot.slane %v4060_v29, 1  ;;  %v4310_v14 = vcombine.low %v203_v48, %v4001_v56  ;;  %v721_v29 = vrot.slane %v4182_v10, 1 }
  0x6f   : > { %3223 = vmatprep.subr.bf16.mxu1 %v3620_v13  ;;  %v724_v56 = vrot.slane %v4208_v34, 1  ;;  %v4331_v48 = vsel %vm704_vm0, %v717_v21, %v718_v55  ;;  %v2666_v10 = vcombine.low %v240_v0, %v4171_v49  ;;  %v556_v49 = vshll.u32 %v4012_v62, 16  ;;  %v207_v0 = vld [vmem:[%s3920_s5 + $0x9c] sm:$0xf] }
  0x70   : > { %v4313_v53 = vsel %vm415_vm1, %v530_v31, %v534_v33  ;;  %v4320_v27 = vsel %vm704_vm0, %v714_v41, %v715_v24  ;;  %v205_v33 = vld [vmem:[%s3920_s5 + $0x90] sm:$0xf]  ;;  %v549_v34 = vshrl.u32 %v4310_v14, 16  ;;  %v551_v31 = vshll.u32 %v4310_v14, 16 }
  0x71   : > { %1532 = vmatmul.mubr.bf16.gmra.mrb[24].mxu1 %v3993_v54  ;;  %v720_v35 = vrot.slane %v2666_v10, 1  ;;  %v727_v55 = vrot.slane %v4224_v63, 1  ;;  %v730_v21 = vrot.slane %v4243_v45, 1  ;;  %v4376_v10 = vld [vmem:[%s5006_s1 + $0x200] sm:$0xff]  }
  0x72   : > { %1539 = vmatprep.mubr.bf16.mxu1 %v4103_v59  ;;  %3224 = vmatpush3.bf16.msra.mxu1 %v3620_v13  ;;  %v541_v13 = vrot.slane %v539_v47, 1  ;;  %v3637_v47 = vld [vmem:[%s5006_s1 + $0xb8] sm:$0xff]   ;;  %v553_v62 = vrot.slane %v551_v31, 1 }
  0x73   : > { %3225 = vmatprep.subr.bf16.mxu1 %v3621_v38 }
  0x74   : > { %v542_v58 = vor.u32 %v541_v13, %v537_v9  ;;  %v4350_v9 = vcombine.low %v205_v33, %v4019_v3  ;;  %v558_v3 = vrot.slane %v556_v49, 1  ;;  %v706_v33 = vrot.slane %v4197_v11, 1 }
  0x75   : > { %1106 = vmatmul.mubr.bf16.gmra.mrb[28].mxu0 %v4240_v5  ;;  %v568_v11 = vshll.u32 %v4028_v12, 16 }
  0x76   : > { %3226 = vmatpush3.bf16.msra.mxu1 %v3621_v38  ;;  %v2667_v38 = vcombine.low %v241_v2, %v4201_v26  ;;  %1113 = vmatprep.mubr.bf16.mxu0 %v4313_v53  ;;  %v4342_v26 = vsel %vm704_vm0, %v720_v35, %v721_v29  ;;  %v4355_v13 = vsel %vm415_vm1, %v542_v58, %v546_v17  ;;  %v726_v29 = vrot.slane %v2668_v16, 1  ;;  %v209_v35 = vld [vmem:[%s3920_s5 + $0xa8] sm:$0xf] }
  0x77   : > { %3227 = vmatprep.subr.bf16.mxu1 %v3624_v20  ;;  %v563_v42 = vshll.u32 %v4350_v9, 16  ;;  %v561_v31 = vshrl.u32 %v4350_v9, 16  ;;  %v4398_v52 = vcombine.low %v209_v35, %v4086_v44 }
  0x78   : > { %v723_v24 = vrot.slane %v2667_v38, 1  ;;  %v4364_v2 = vsel %vm704_vm0, %v726_v29, %v727_v55 }
  0x79   : > { %1540 = vmatmul.mubr.bf16.gmra.mrb[28].mxu1 %v4057_v28  ;;  %v587_v44 = vshll.u32 %v4398_v52, 16 }
  0x7a   : > { %1547 = vmatprep.mubr.bf16.mxu1 %v4164_v19  ;;  %3228 = vmatpush3.bf16.msra.mxu1 %v3624_v20  ;;  %v4345_v43 = vsel %vm704_vm0, %v723_v24, %v724_v56  ;;  %v243_v20 = vld [vmem:[%s3920_s5 + $0x60] sm:$0xe]  ;;  %v570_v24 = vrot.slane %v568_v11, 1 }
  0x7b   : > { %3229 = vmatprep.subr.bf16.mxu1 %v3637_v47  ;;  %v2669_v41 = vcombine.low %v243_v20, %v4237_v40  ;;  %v235_v56 = vld [vmem:[%s3920_s5] sm:$0xe]  ;;  %v554_v40 = vor.u32 %v553_v62, %v549_v34  ;;  %v4381_v34 = vcombine.low %v207_v0, %v4064_v7  ;;  %v580_v20 = vshll.u32 %v4075_v36, 16  ;;  %v211_v62 = vld [vmem:[%s3920_s5 + $0xb4] sm:$0xf] }
  0x7c   : > { %v4412_v29 = vcombine.low %v211_v62, %v4128_v6  ;;  %v585_v36 = vshrl.u32 %v4398_v52, 16  ;;  %v3660_v62 = vld [vmem:[%s3920_s5 + $0x10] sm:$0xf] }
  0x7d   : > { %1114 = vmatmul.mubr.bf16.gmra.mrb[32].mxu0 %v4257_v60  ;;  %v729_v63 = vrot.slane %v2669_v41, 1  ;;  %v4385_v58 = vsel %vm415_vm1, %v554_v40, %v558_v3  ;;  %v575_v49 = vshll.u32 %v4381_v34, 16  ;;  %v573_v55 = vshrl.u32 %v4381_v34, 16 }
  0x7e   : > { %3230 = vmatpush3.bf16.msra.mxu1 %v3637_v47  ;;  %1121 = vmatprep.mubr.bf16.mxu0 %v4355_v13  ;;  %v2661_v47 = vcombine.low %v235_v56, %v4190_v61  ;;  %v565_v61 = vrot.slane %v563_v42, 1  ;;  %v592_v3 = vshll.u32 %v4092_v51, 16  ;;  %v213_v42 = vld [vmem:[%s3920_s5 + $0xc0] sm:$0xf]  ;;  %v599_v6 = vshll.u32 %v4412_v29, 16 }
  0x7f   : > { %v4369_v45 = vsel %vm704_vm0, %v729_v63, %v730_v21  ;;  %3263 = vmatprep.subr.bf16.mxu1 %v4376_v10  ;;  %v577_v16 = vrot.slane %v575_v49, 1  ;;  %v582_v21 = vrot.slane %v580_v20, 1  ;;  %v589_v63 = vrot.slane %v587_v44, 1 }
  0x80   : > { %v705_v38 = vrot.slane %v2661_v47, 1  ;;  %v566_v7 = vor.u32 %v565_v61, %v561_v31  ;;  %v594_v40 = vrot.slane %v592_v3, 1  ;;  %v4426_v47 = vcombine.low %v213_v42, %v4147_v30  ;;  %v3627_v3 = vld [vmem:[%s5006_s1 + $0x1c8] sm:$0xff]  }
  0x81   : > { %1548 = vmatmul.mubr.bf16.gmra.mrb[32].mxu1 %v4117_v1  ;;  %v578_v41 = vor.u32 %v577_v16, %v573_v55  ;;  %v590_v56 = vor.u32 %v589_v63, %v585_v36  ;;  %v597_v51 = vshrl.u32 %v4412_v29, 16  ;;  %v604_v31 = vshll.u32 %v4140_v4, 16  ;;  %v236_v16 = vld [vmem:[%s3920_s5 + $0xc] sm:$0xe]  ;;  %v3626_v63 = vld [vmem:[%s5006_s1 + $0x180] sm:$0xff]  }
  0x82   : > { %1555 = vmatprep.mubr.bf16.mxu1 %v4218_v8  ;;  %v4389_v17 = vsel %vm704_vm0, %v705_v38, %v706_v33  ;;  %v4401_v12 = vsel %vm415_vm1, %v566_v7, %v570_v24  ;;  %v601_v38 = vrot.slane %v599_v6, 1  ;;  %v611_v30 = vshll.u32 %v4426_v47, 16  ;;  %v3628_v42 = vld [vmem:[%s5006_s1 + $0x188] sm:$0xff]   ;;  %v3633_v6 = vld [vmem:[%s5006_s1 + $0x1d8] sm:$0xff]  }
  0x83   : > { %v4415_v0 = vsel %vm415_vm1, %v578_v41, %v582_v21  ;;  %v4429_v33 = vsel %vm415_vm1, %v590_v56, %v594_v40  ;;  %v606_v11 = vrot.slane %v604_v31, 1  ;;  %v609_v7 = vshrl.u32 %v4426_v47, 16  ;;  %v3661_v21 = vld [vmem:[%s3920_s5 + $0x14] ss:$0 sps:$4 sm:$0x11]   ;;  %v3639_v31 = vld [vmem:[%s5006_s1 + $0x1a0] sm:$0xff]  }
  0x84   : > { %v602_v61 = vor.u32 %v601_v38, %v597_v51  ;;  %v613_v4 = vrot.slane %v611_v30, 1  ;;  %v616_v24 = vshll.u32 %v4153_v37, 16  ;;  %v2662_v41 = vcombine.low %v236_v16, %v3660_v62  ;;  %v3631_v56 = vld [vmem:[%s5006_s1 + $0x1d0] sm:$0xff]   ;;  %v3634_v51 = vld [vmem:[%s5006_s1 + $0x198] sm:$0xff]   ;;  %v3638_v38 = vld [vmem:[%s5006_s1 + $0x1e0] sm:$0xff]  }
  0x85   : > { %1122 = vmatmul.mubr.bf16.gmra.mrb[36].mxu0 %v4279_v25  ;;  %v709_v44 = vrot.slane %v3661_v21, 1  ;;  %v3632_v40 = vld [vmem:[%s5006_s1 + $0x190] sm:$0xff]  }
  0x86   : > { %1129 = vmatprep.mubr.bf16.mxu0 %v4385_v58  ;;  %v4439_v35 = vsel %vm415_vm1, %v602_v61, %v606_v11  ;;  %v614_v49 = vor.u32 %v613_v4, %v609_v7  ;;  %v618_v55 = vrot.slane %v616_v24, 1  ;;  %v708_v37 = vrot.slane %v2662_v41, 1  ;;  %v3640_v61 = vld [vmem:[%s5006_s1 + $0x1e8] sm:$0xff]   ;;  %v3644_v30 = vld [vmem:[%s5006_s1 + $0x1f0] sm:$0xff]   ;;  %v3646_v4 = vld [vmem:[%s5006_s1 + $0x1f8] sm:$0xff]  }
  0x87   : > { %v3641_v11 = vld [vmem:[%s5006_s1 + $0x1a8] sm:$0xff]   ;;  %v3645_v7 = vld [vmem:[%s5006_s1 + $0x1b0] sm:$0xff]   ;;  %v3647_v24 = vld [vmem:[%s5006_s1 + $0x1b8] sm:$0xff]  }
  0x88   : > { %v4449_v20 = vsel %vm415_vm1, %v614_v49, %v618_v55  ;;  %v710_v36 = vsel %vm704_vm0, %v708_v37, %v709_v44  ;;  %v3650_v49 = vld [vmem:[%s5006_s1 + $0x208] sm:$0xff]  }
  0x89   : > { %1556 = vmatmul.mubr.bf16.gmra.mrb[36].mxu1 %v4179_v57 }
  0x8a   : > { %1563 = vmatprep.mubr.bf16.mxu1 %v4247_v23 }
  0x8d   : > { %1130 = vmatmul.mubr.bf16.gmra.mrb[40].mxu0 %v4310_v14 }
  0x8e   : > { %1137 = vmatprep.mubr.bf16.mxu0 %v4401_v12 }
  0x91   : > { %1564 = vmatmul.mubr.bf16.gmra.mrb[40].mxu1 %v4205_v32 }
  0x92   : > { %1571 = vmatprep.mubr.bf16.mxu1 %v4260_v15 }
  0x95   : > { %1138 = vmatmul.mubr.bf16.gmra.mrb[44].mxu0 %v4350_v9 }
  0x96   : > { %1145 = vmatprep.mubr.bf16.mxu0 %v4415_v0 }
  0x99   : > { %1572 = vmatmul.mubr.bf16.gmra.mrb[44].mxu1 %v4221_v50 }
  0x9a   : > { %1579 = vmatprep.mubr.bf16.mxu1 %v4283_v39 }
  0x9d   : > { %1146 = vmatmul.mubr.bf16.gmra.mrb[48].mxu0 %v4381_v34 }
  0x9e   : > { %1153 = vmatprep.mubr.bf16.mxu0 %v4429_v33 }
  0xa1   : > { %1580 = vmatmul.mubr.bf16.gmra.mrb[48].mxu1 %v4240_v5 }
  0xa2   : > { %1587 = vmatprep.mubr.bf16.mxu1 %v4313_v53 }
  0xa5   : > { %1154 = vmatmul.mubr.bf16.gmra.mrb[52].mxu0 %v4398_v52 }
  0xa6   : > { %1161 = vmatprep.mubr.bf16.mxu0 %v4439_v35 }
  0xa9   : > { %1588 = vmatmul.mubr.bf16.gmra.mrb[52].mxu1 %v4257_v60 }
  0xaa   : > { %1595 = vmatprep.mubr.bf16.mxu1 %v4355_v13 }
  0xad   : > { %1162 = vmatmul.mubr.bf16.gmra.mrb[56].mxu0 %v4412_v29 }
  0xae   : > { %1169 = vmatprep.mubr.bf16.mxu0 %v4449_v20 }
  0xb1   : > { %1596 = vmatmul.mubr.bf16.gmra.mrb[56].mxu1 %v4279_v25 }
  0xb2   : > { %1603 = vmatprep.mubr.bf16.mxu1 %v4385_v58 }
  0xb5   : > { %1170 = vmatmul.mubr.bf16.gmra.mrb[60].mxu0 %v4426_v47 }
  0xb6   : > { %3183 = vmatprep.mubr.bf16.mxu0 %v710_v36 }
  0xb9   : > { %1604 = vmatmul.mubr.bf16.gmra.mrb[60].mxu1 %v4310_v14 }
  0xba   : > { %1611 = vmatprep.mubr.bf16.mxu1 %v4401_v12 }
  0xbd   : > { %3184 = vmatmul.mubr.bf16.vlgmr.msra.gmra.mrb[64].mxu0 %v4316_v22 }
  0xbe   : > { %3032 = vmatpush3.bf16.msra.mxu0 %v3626_v63  ;;  %3187 = vmatprep.mubr.bf16.mxu0 %v4320_v27  ;;  %v5036_v63 = vld [vmem:[#allocation13_spill] sm:$0xff] }
  0xbf   : > { %3033 = vmatprep.subr.bf16.mxu0 %v3627_v3 }
  0xc1   : > { %1612 = vmatmul.mubr.bf16.gmra.mrb[64].mxu1 %v4350_v9 }
  0xc2   : > { %1619 = vmatprep.mubr.bf16.mxu1 %v4415_v0  ;;  %3034 = vmatpush3.bf16.msra.mxu0 %v3628_v42 }
  0xc3   : > { %3035 = vmatprep.subr.bf16.mxu0 %v3631_v56 }
  0xc5   : > { %3188 = vmatmul.mubr.bf16.gmra.mrb[68].mxu0 %v4331_v48 }
  0xc6   : > { %3036 = vmatpush3.bf16.msra.mxu0 %v3632_v40  ;;  %3191 = vmatprep.mubr.bf16.mxu0 %v4342_v26 }
  0xc7   : > { %3037 = vmatprep.subr.bf16.mxu0 %v3633_v6 }
  0xc9   : > { %1620 = vmatmul.mubr.bf16.gmra.mrb[68].mxu1 %v4381_v34 }
  0xca   : > { %1627 = vmatprep.mubr.bf16.mxu1 %v4429_v33  ;;  %3038 = vmatpush3.bf16.msra.mxu0 %v3634_v51 }
  0xcb   : > { %3039 = vmatprep.subr.bf16.mxu0 %v3638_v38 }
  0xcd   : > { %3192 = vmatmul.mubr.bf16.gmra.mrb[72].mxu0 %v4345_v43 }
  0xce   : > { %3040 = vmatpush3.bf16.msra.mxu0 %v3639_v31  ;;  %3195 = vmatprep.mubr.bf16.mxu0 %v4364_v2 }
  0xcf   : > { %3041 = vmatprep.subr.bf16.mxu0 %v3640_v61  ;;  %v215_v61 = vld [vmem:[%s3920_s5 + $0xcc] sm:$0xf] }
  0xd1   : > { %1628 = vmatmul.mubr.bf16.gmra.mrb[72].mxu1 %v4398_v52 }
  0xd2   : > { %1635 = vmatprep.mubr.bf16.mxu1 %v4439_v35  ;;  %3042 = vmatpush3.bf16.msra.mxu0 %v3641_v11  ;;  %v216_v11 = vld [vmem:[%s3920_s5 + $0xd0] sm:$0xf] }
  0xd3   : > { %3043 = vmatprep.subr.bf16.mxu0 %v3644_v30 }
  0xd5   : > { %3196 = vmatmul.mubr.bf16.gmra.mrb[76].mxu0 %v4369_v45 }
  0xd6   : > { %3044 = vmatpush3.bf16.msra.mxu0 %v3645_v7  ;;  %2029 = vmatprep.mubr.bf16.mxu0 %v4039_v18  ;;  %v3651_v18 = vld [vmem:[%s5006_s1 + $0x210] sm:$0xff]  }
  0xd7   : > { %3045 = vmatprep.subr.bf16.mxu0 %v3646_v4 }
  0xd9   : > { %1636 = vmatmul.mubr.bf16.gmra.mrb[76].mxu1 %v4412_v29 }
  0xda   : > { %3231 = vmatprep.mubr.bf16.mxu1 %v4389_v17  ;;  %3046 = vmatpush3.bf16.msra.mxu0 %v3647_v24 }
  0xdd   : > { %2030 = vmatmul.mubr.bf16.vlgmr.msra.gmra.mrb[80].mxu0 %v3993_v54  ;;  %v3652_v54 = vld [vmem:[%s5006_s1 + $0x218] sm:$0xff]  }
  0xde   : > { %2037 = vmatprep.mubr.bf16.mxu0 %v4103_v59  ;;  %v3653_v59 = vld [vmem:[%s5006_s1 + $0x220] sm:$0xff]  }
  0xe1   : > { %3232 = vmatmul.mubr.bf16.vlgmr.msra.gmra.mrb[80].mxu1 %v710_v36 }
  0xe2   : > { %3264 = vmatpush3.bf16.msra.mxu1 %v4376_v10  ;;  %3235 = vmatprep.mubr.bf16.mxu1 %v4316_v22 }
  0xe3   : > { %3265 = vmatprep.subr.bf16.mxu1 %v3650_v49 }
  0xe5   : > { %2038 = vmatmul.mubr.bf16.gmra.mrb[84].mxu0 %v4057_v28  ;;  %v3654_v28 = vld [vmem:[%s5006_s1 + $0x228] sm:$0xff]  }
  0xe6   : > { %3266 = vmatpush3.bf16.msra.mxu1 %v3650_v49  ;;  %2045 = vmatprep.mubr.bf16.mxu0 %v4164_v19  ;;  %v3655_v19 = vld [vmem:[%s5006_s1 + $0x230] sm:$0xff]  }
  0xe7   : > { %3267 = vmatprep.subr.bf16.mxu1 %v3651_v18 }
  0xe9   : > { %3236 = vmatmul.mubr.bf16.gmra.mrb[84].mxu1 %v4320_v27 }
  0xea   : > { %3239 = vmatprep.mubr.bf16.mxu1 %v4331_v48  ;;  %3268 = vmatpush3.bf16.msra.mxu1 %v3651_v18 }
  0xeb   : > { %3269 = vmatprep.subr.bf16.mxu1 %v3652_v54 }
  0xed   : > { %2046 = vmatmul.mubr.bf16.gmra.mrb[88].mxu0 %v4117_v1  ;;  %v3656_v1 = vld [vmem:[%s5006_s1 + $0x238] sm:$0xff]  }
  0xee   : > { %3270 = vmatpush3.bf16.msra.mxu1 %v3652_v54  ;;  %2053 = vmatprep.mubr.bf16.mxu0 %v4218_v8  ;;  %v5033_v8 = vld [vmem:[#allocation10_spill] sm:$0xff] }
  0xef   : > { %3271 = vmatprep.subr.bf16.mxu1 %v3653_v59 }
  0xf1   : > { %3240 = vmatmul.mubr.bf16.gmra.mrb[88].mxu1 %v4342_v26 }
  0xf2   : > { %3243 = vmatprep.mubr.bf16.mxu1 %v4345_v43  ;;  %3272 = vmatpush3.bf16.msra.mxu1 %v3653_v59 }
  0xf3   : > { %3273 = vmatprep.subr.bf16.mxu1 %v3654_v28 }
  0xf5   : > { %2054 = vmatmul.mubr.bf16.gmra.mrb[92].mxu0 %v4179_v57  ;;  %v5031_v57 = vld [vmem:[#allocation8_spill] sm:$0xff] }
  0xf6   : > { %3274 = vmatpush3.bf16.msra.mxu1 %v3654_v28  ;;  %2061 = vmatprep.mubr.bf16.mxu0 %v4247_v23  ;;  %v5032_v23 = vld [vmem:[#allocation9_spill] sm:$0xff] }
  0xf7   : > { %3275 = vmatprep.subr.bf16.mxu1 %v3655_v19 }
  0xf9   : > { %3244 = vmatmul.mubr.bf16.gmra.mrb[92].mxu1 %v4364_v2 }
  0xfa   : > { %3247 = vmatprep.mubr.bf16.mxu1 %v4369_v45  ;;  %3276 = vmatpush3.bf16.msra.mxu1 %v3655_v19  ;;  %v3658_v19 = vld [vmem:[%s3920_s5 + $0xd4] ss:$0 sps:$4 sm:$0x11]  }
  0xfb   : > { %3277 = vmatprep.subr.bf16.mxu1 %v3656_v1 }
  0xfd   : > { %2062 = vmatmul.mubr.bf16.gmra.mrb[96].mxu0 %v4205_v32 }
  0xfe   : > { %3278 = vmatpush3.bf16.msra.mxu1 %v3656_v1  ;;  %2069 = vmatprep.mubr.bf16.mxu0 %v4260_v15  ;;  %v5034_v15 = vld [vmem:[#allocation11_spill] sm:$0xff] }
 0x101   : > { %3248 = vmatmul.mubr.bf16.gmra.mrb[0].mxu1 %v3972_v46 }
 0x102   : > { %3251 = vmatprep.mubr.bf16.mxu1 %v5031_v57 }
 0x105   : > { %2070 = vmatmul.mubr.bf16.gmra.mrb[100].mxu0 %v4221_v50  ;;  %v5035_v50 = vld [vmem:[#allocation12_spill] sm:$0xff] }
 0x106   : > { %2077 = vmatprep.mubr.bf16.mxu0 %v4283_v39 }
 0x109   : > { %3252 = vmatmul.mubr.bf16.gmra.mrb[4].mxu1 %v5032_v23 }
 0x10a   : > { %3255 = vmatprep.mubr.bf16.mxu1 %v5033_v8 }
 0x10c   : > { %v2775_v10 = vpop.f32.mrb[0].mxu0 }
 0x10d   : > { %v2776_v17 = vpop.f32.mrb[1].mxu0  ;;  %2078 = vmatmul.mubr.bf16.gmra.mrb[104].mxu0 %v4240_v5 }
 0x10e   : > { %v4567_v55 = vadd.f32 %v2776_v17, %v2775_v10  ;;  %v2778_v16 = vpop.f32.mrb[2].mxu0  ;;  %2085 = vmatprep.mubr.bf16.mxu0 %v4313_v53 }
 0x10f   : > { %v2779_v32 = vpop.f32.mrb[3].mxu0 }
 0x110   : > { %v4569_v62 = vadd.f32 %v2779_v32, %v2778_v16 }
 0x111   : > { %3256 = vmatmul.mubr.bf16.gmra.mrb[8].mxu1 %v5034_v15 }
 0x112   : > { %3259 = vmatprep.mubr.bf16.mxu1 %v5035_v50 }
 0x114   : > { %v2781_v39 = vpop.f32.mrb[4].mxu0 }
 0x115   : > { %v2782_v41 = vpop.f32.mrb[5].mxu0  ;;  %2086 = vmatmul.mubr.bf16.gmra.mrb[108].mxu0 %v4257_v60 }
 0x116   : > { %v4575_v37 = vadd.f32 %v2782_v41, %v2781_v39  ;;  %v2784_v21 = vpop.f32.mrb[6].mxu0  ;;  %2093 = vmatprep.mubr.bf16.mxu0 %v4355_v13 }
 0x117   : > { %v2785_v44 = vpop.f32.mrb[7].mxu0 }
 0x118   : > { %v4578_v36 = vadd.f32 %v2785_v44, %v2784_v21 }
 0x119   : > { %3260 = vmatmul.mubr.bf16.gmra.mrb[12].mxu1 %v5036_v63 }
 0x11a   : > { %3279 = vmatprep.mubr.bf16.mxu1 %v4316_v22 }
 0x11c   : > { %v2787_v53 = vpop.f32.mrb[8].mxu0 }
 0x11d   : > { %2094 = vmatmul.mubr.bf16.gmra.mrb[112].mxu0 %v4279_v25  ;;  %v2788_v5 = vpop.f32.mrb[9].mxu0 }
 0x11e   : > { %v4584_v3 = vadd.f32 %v2788_v5, %v2787_v53  ;;  %v2790_v42 = vpop.f32.mrb[10].mxu0  ;;  %2101 = vmatprep.mubr.bf16.mxu0 %v4385_v58 }
 0x11f   : > { %v2791_v60 = vpop.f32.mrb[11].mxu0 }
 0x120   : > { %v4588_v56 = vadd.f32 %v2791_v60, %v2790_v42 }
 0x121   : > { %3280 = vmatmul.mubr.bf16.vlgmr.msra.gmra.mrb[80].mxu1 %v4320_v27 }
 0x122   : > { %3283 = vmatprep.mubr.bf16.mxu1 %v4331_v48 }
 0x125   : > { %2102 = vmatmul.mubr.bf16.gmra.mrb[116].mxu0 %v4310_v14 }
 0x126   : > { %2109 = vmatprep.mubr.bf16.mxu0 %v4401_v12 }
 0x128   : > { %v2793_v13 = vpop.f32.mrb[12].mxu0 }
 0x129   : > { %3284 = vmatmul.mubr.bf16.gmra.mrb[84].mxu1 %v4342_v26  ;;  %v2794_v25 = vpop.f32.mrb[13].mxu0 }
 0x12a   : > { %v4594_v22 = vadd.f32 %v2794_v25, %v2793_v13  ;;  %v2796_v40 = vpop.f32.mrb[14].mxu0  ;;  %3287 = vmatprep.mubr.bf16.mxu1 %v4345_v43 }
 0x12b   : > { %v2797_v58 = vpop.f32.mrb[15].mxu0 }
 0x12c   : > { %v4597_v27 = vadd.f32 %v2797_v58, %v2796_v40  ;;  %v252_v40 = vld [vmem:[%s3920_s5 + $0xcc] sm:$0xe]  ;;  %s4832_s5 = sand.u32 1, %s3748_s13  }
 0x12d   : > { %2110 = vmatmul.mubr.bf16.gmra.mrb[120].mxu0 %v4350_v9  ;;  %s2622_s8 = sshll.u32 %s4832_s5, 8  ;;  %s2493_s24 = scalar_lea.sflag [#allocation3], %s4832_s5 }
 0x12e   : > { %2117 = vmatprep.mubr.bf16.mxu0 %v4415_v0  ;;  %s4845_s9 = scalar_lea.vmem [#allocation2], %s2622_s8 }
 0x12f   : > { %s2511_s11 = sshll.u32 %s4845_s9, 4  ;;  %s4929_s11 = int_to_ptr.vmem [resolvable:$true] %s2511_s11 }
 0x130   : > { %v2799_v14 = vpop.f32.mrb[16].mxu0  ;;  %s3662_s25 = scalar_lea.vmem %s4929_s11, 4096  ;;  %p3669_p0 = scmp.lt.s32.totalorder %s4929_s11, %s3667_s27 }
 0x131   : > { %3288 = vmatmul.mubr.bf16.gmra.mrb[88].mxu1 %v4364_v2  ;;  %v2800_v48 = vpop.f32.mrb[17].mxu0  ;;  %p3663_p11 = scmp.ne.s32.totalorder %s4929_s11, %s3662_s25  ;;  %p3670_p1 = scmp.lt.s32.totalorder %s3668_s28, %s3662_s25 }
 0x132   : > { %3291 = vmatprep.mubr.bf16.mxu1 %v4369_v45  ;;  %v4603_v12 = vadd.f32 %v2800_v48, %v2799_v14  ;;  %v2802_v6 = vpop.f32.mrb[18].mxu0 }
 0x133   : > { %v2803_v51 = vpop.f32.mrb[19].mxu0  ;;  %p3664_p12 = pnand %p3663_p11, %p3820_p5  ;;  %p3671_p2 = por %p3670_p1, %p3669_p0 }
 0x134   : > { %v2911_v26 = vpop.f32.mrb[16].mxu1  ;;  %v4607_v9 = vadd.f32 %v2803_v51, %v2802_v6 }
 0x135   : > { %v2912_v43 = vpop.f32.mrb[17].mxu1  ;;  %2118 = vmatmul.mubr.bf16.gmra.mrb[124].mxu0 %v4381_v34  ;;  %v4619_v34 = vcombine.low %v215_v61, %v216_v11  ;;  %p3665_p13 = pneg %p3664_p12 }
 0x136   : > { %v4605_v38 = vadd.f32 %v2912_v43, %v2911_v26  ;;  %v2914_v31 = vpop.f32.mrb[18].mxu1  ;;  %2125 = vmatprep.mubr.bf16.mxu0 %v4429_v33 }
 0x137   : > { %v2915_v0 = vpop.f32.mrb[19].mxu1  ;;  %v623_v1 = vshll.u32 %v4619_v34, 16  ;;  %p3672_p3 = pnand %p3671_p2, %p3665_p13 }
 0x138   : > { %v4610_v2 = vadd.f32 %v2915_v0, %v2914_v31  ;;  %v2805_v45 = vpop.f32.mrb[20].mxu0 }
 0x139   : > { %3292 = vmatmul.mubr.bf16.gmra.mrb[92].mxu1 %v3972_v46  ;;  %v2806_v30 = vpop.f32.mrb[21].mxu0  ;;  %v625_v21 = vrot.slane %v623_v1, 1 }
 0x13a   : > { %3295 = vmatprep.mubr.bf16.mxu1 %v5031_v57  ;;  %v4617_v4 = vadd.f32 %v2806_v30, %v2805_v45  ;;  %v2808_v24 = vpop.f32.mrb[22].mxu0  ;;  %v5037_v45 = vld [vmem:[#allocation14_spill] sm:$0xff]  ;;  %v757_v30 = vrot.slane %v3658_v19, 1 }
 0x13b   : > { %v2809_v18 = vpop.f32.mrb[23].mxu0 }
 0x13c   : > { %v2917_v7 = vpop.f32.mrb[20].mxu1  ;;  %v4623_v59 = vadd.f32 %v2809_v18, %v2808_v24 }
 0x13d   : > { %v2918_v49 = vpop.f32.mrb[21].mxu1  ;;  %2126 = vmatmul.mubr.bf16.gmra.mrb[128].mxu0 %v4398_v52  ;;  %v621_v52 = vshrl.u32 %v4619_v34, 16 }
 0x13e   : > { %v4621_v54 = vadd.f32 %v2918_v49, %v2917_v7  ;;  %v2920_v33 = vpop.f32.mrb[22].mxu1  ;;  %2133 = vmatprep.mubr.bf16.mxu0 %v4439_v35  ;;  %v628_v35 = vshll.u32 %v3658_v19, 16 }
 0x13f   : > { %v2921_v46 = vpop.f32.mrb[23].mxu1  ;;  %v626_v42 = vor.u32 %v625_v21, %v621_v52 }
 0x140   : > { %v4626_v28 = vadd.f32 %v2921_v46, %v2920_v33  ;;  %v2811_v57 = vpop.f32.mrb[24].mxu0  ;;  %v630_v60 = vrot.slane %v628_v35, 1 }
 0x141   : > { %3296 = vmatmul.mubr.bf16.gmra.mrb[0].mxu1 %v5032_v23  ;;  %v2812_v10 = vpop.f32.mrb[25].mxu0 }
 0x142   : > { %3299 = vmatprep.mubr.bf16.mxu1 %v5033_v8  ;;  %v4633_v16 = vadd.f32 %v2812_v10, %v2811_v57  ;;  %v2814_v32 = vpop.f32.mrb[26].mxu0 }
 0x143   : > { %v2815_v41 = vpop.f32.mrb[27].mxu0 }
 0x144   : > { %v2923_v17 = vpop.f32.mrb[24].mxu1  ;;  %v4638_v53 = vadd.f32 %v2815_v41, %v2814_v32 }
 0x145   : > { %v2924_v39 = vpop.f32.mrb[25].mxu1  ;;  %2134 = vmatmul.mubr.bf16.gmra.mrb[132].mxu0 %v4412_v29  ;;  %v631_v29 = vsel %vm415_vm1, %v626_v42, %v630_v60 }
 0x146   : > { %v4636_v44 = vadd.f32 %v2924_v39, %v2923_v17  ;;  %v2926_v23 = vpop.f32.mrb[26].mxu1  ;;  %2141 = vmatprep.mubr.bf16.mxu0 %v4449_v20 }
 0x147   : > { %v2927_v5 = vpop.f32.mrb[27].mxu1 }
 0x148   : > { %v4641_v8 = vadd.f32 %v2927_v5, %v2926_v23  ;;  %v2817_v13 = vpop.f32.mrb[28].mxu0 }
 0x149   : > { %3300 = vmatmul.mubr.bf16.gmra.mrb[4].mxu1 %v5034_v15  ;;  %v2818_v25 = vpop.f32.mrb[29].mxu0  ;;  %v2678_v15 = vcombine.low %v252_v40, %v216_v11 }
 0x14a   : > { %3303 = vmatprep.mubr.bf16.mxu1 %v5035_v50  ;;  %v4647_v14 = vadd.f32 %v2818_v25, %v2817_v13  ;;  %v2820_v48 = vpop.f32.mrb[30].mxu0 }
 0x14b   : > { %v2821_v6 = vpop.f32.mrb[31].mxu0  ;;  %v756_v61 = vrot.slane %v2678_v15, 1 }
 0x14c   : > { %v2929_v58 = vpop.f32.mrb[28].mxu1  ;;  %v4652_v51 = vadd.f32 %v2821_v6, %v2820_v48 }
 0x14d   : > { %v2930_v26 = vpop.f32.mrb[29].mxu1  ;;  %2142 = vmatmul.mubr.bf16.gmra.mrb[136].mxu0 %v4426_v47  ;;  %v758_v57 = vsel %vm704_vm0, %v756_v61, %v757_v30 }
 0x14e   : > { %v4650_v43 = vadd.f32 %v2930_v26, %v2929_v58  ;;  %v2932_v20 = vpop.f32.mrb[30].mxu1  ;;  %2149 = vmatprep.mubr.bf16.mxu0 %v631_v29 }
 0x14f   : > { %v2933_v31 = vpop.f32.mrb[31].mxu1 }
 0x150   : > { %v4655_v50 = vadd.f32 %v2933_v31, %v2932_v20  ;;  %v2823_v0 = vpop.f32.mrb[32].mxu0 }
 0x151   : > { %3304 = vmatmul.mubr.bf16.gmra.mrb[8].mxu1 %v5036_v63  ;;  %v2824_v7 = vpop.f32.mrb[33].mxu0 }
 0x152   : > { %3307 = vmatprep.mubr.bf16.mxu1 %v5037_v45  ;;  %v2825_v49 = vadd.f32 %v2824_v7, %v2823_v0  ;;  %v2826_v18 = vpop.f32.mrb[34].mxu0 }
 0x153   : > { %v2827_v46 = vpop.f32.mrb[35].mxu0 }
 0x154   : > { %v2935_v24 = vpop.f32.mrb[32].mxu1  ;;  %v2828_v47 = vadd.f32 %v2827_v46, %v2826_v18 }
 0x155   : > { %v2936_v33 = vpop.f32.mrb[33].mxu1  ;;  %2150 = vmatmul.mubr.bf16.gmra.mrb[140].mxu0 %v4619_v34 }
 0x156   : > { %v4659_v11 = vadd.f32 %v2936_v33, %v2935_v24  ;;  %v2938_v1 = vpop.f32.mrb[34].mxu1 }
 0x157   : > { %v2939_v10 = vpop.f32.mrb[35].mxu1 }
 0x158   : > { %v4663_v63 = vadd.f32 %v2939_v10, %v2938_v1  ;;  %v2829_v17 = vpop.f32.mrb[36].mxu0 }
 0x159   : > { %3308 = vmatmul.mubr.bf16.gmra.mrb[12].mxu1 %v758_v57  ;;  %v2830_v19 = vpop.f32.mrb[37].mxu0 }
 0x15a   : > { %v2831_v39 = vadd.f32 %v2830_v19, %v2829_v17  ;;  %v2832_v41 = vpop.f32.mrb[38].mxu0 }
 0x15b   : > { %v2833_v21 = vpop.f32.mrb[39].mxu0 }
 0x15c   : > { %v2941_v32 = vpop.f32.mrb[36].mxu1  ;;  %v2834_v5 = vadd.f32 %v2833_v21, %v2832_v41 }
 0x15d   : > { %v2942_v52 = vpop.f32.mrb[37].mxu1 }
 0x15e   : > { %v4665_v35 = vadd.f32 %v2942_v52, %v2941_v32  ;;  %v2944_v23 = vpop.f32.mrb[38].mxu1 }
 0x15f   : > { %v2945_v42 = vpop.f32.mrb[39].mxu1 }
 0x160   : > { %v4667_v60 = vadd.f32 %v2945_v42, %v2944_v23  ;;  %v2835_v13 = vpop.f32.mrb[40].mxu0 }
 0x161   : > { %v2836_v25 = vpop.f32.mrb[41].mxu0 }
 0x162   : > { %v2837_v40 = vadd.f32 %v2836_v25, %v2835_v13  ;;  %v2838_v58 = vpop.f32.mrb[42].mxu0 }
 0x163   : > { %v2839_v26 = vpop.f32.mrb[43].mxu0 }
 0x164   : > { %v2947_v34 = vpop.f32.mrb[40].mxu1  ;;  %v2840_v20 = vadd.f32 %v2839_v26, %v2838_v58 }
 0x165   : > { %v2948_v48 = vpop.f32.mrb[41].mxu1 }
 0x166   : > { %v4669_v6 = vadd.f32 %v2948_v48, %v2947_v34  ;;  %v2950_v29 = vpop.f32.mrb[42].mxu1 }
 0x167   : > { %v2951_v15 = vpop.f32.mrb[43].mxu1 }
 0x168   : > { %v4671_v31 = vadd.f32 %v2951_v15, %v2950_v29  ;;  %v2841_v0 = vpop.f32.mrb[44].mxu0 }
 0x169   : > { %v2842_v45 = vpop.f32.mrb[45].mxu0 }
 0x16a   : > { %v2843_v30 = vadd.f32 %v2842_v45, %v2841_v0  ;;  %v2844_v7 = vpop.f32.mrb[46].mxu0 }
 0x16b   : > { %v2845_v18 = vpop.f32.mrb[47].mxu0 }
 0x16c   : > { %v2953_v61 = vpop.f32.mrb[44].mxu1  ;;  %v2846_v1 = vadd.f32 %v2845_v18, %v2844_v7 }
 0x16d   : > { %v2954_v24 = vpop.f32.mrb[45].mxu1 }
 0x16e   : > { %v4673_v33 = vadd.f32 %v2954_v24, %v2953_v61  ;;  %v2956_v46 = vpop.f32.mrb[46].mxu1 }
 0x16f   : > { %v2957_v57 = vpop.f32.mrb[47].mxu1 }
 0x170   : > { %v4675_v10 = vadd.f32 %v2957_v57, %v2956_v46  ;;  %v2847_v17 = vpop.f32.mrb[48].mxu0 }
 0x171   : > { %v2848_v19 = vpop.f32.mrb[49].mxu0 }
 0x172   : > { %v4677_v41 = vadd.f32 %v2848_v19, %v2847_v17  ;;  %v2850_v52 = vpop.f32.mrb[50].mxu0 }
 0x173   : > { %v2851_v23 = vpop.f32.mrb[51].mxu0 }
 0x174   : > { %v2959_v32 = vpop.f32.mrb[48].mxu1  ;;  %v4679_v25 = vadd.f32 %v2851_v23, %v2850_v52 }
 0x175   : > { %v2960_v21 = vpop.f32.mrb[49].mxu1 }
 0x176   : > { %v2961_v42 = vadd.f32 %v2960_v21, %v2959_v32  ;;  %v2962_v13 = vpop.f32.mrb[50].mxu1 }
 0x177   : > { %v2963_v34 = vpop.f32.mrb[51].mxu1 }
 0x178   : > { %v4681_v58 = vadd.f32 %v2961_v42, %v2825_v49  ;;  %v2964_v48 = vadd.f32 %v2963_v34, %v2962_v13  ;;  %v2853_v29 = vpop.f32.mrb[52].mxu0 }
 0x179   : > { %v2854_v15 = vpop.f32.mrb[53].mxu0 }
 0x17a   : > { %v4683_v26 = vadd.f32 %v2964_v48, %v2828_v47  ;;  %v4685_v45 = vadd.f32 %v2854_v15, %v2853_v29  ;;  %v2856_v61 = vpop.f32.mrb[54].mxu0 }
 0x17b   : > { %v2857_v24 = vpop.f32.mrb[55].mxu0 }
 0x17c   : > { %v2965_v0 = vpop.f32.mrb[52].mxu1  ;;  %v4687_v57 = vadd.f32 %v2857_v24, %v2856_v61 }
 0x17d   : > { %v2966_v7 = vpop.f32.mrb[53].mxu1 }
 0x17e   : > { %v2967_v18 = vadd.f32 %v2966_v7, %v2965_v0  ;;  %v2968_v46 = vpop.f32.mrb[54].mxu1 }
 0x17f   : > { %v2969_v17 = vpop.f32.mrb[55].mxu1 }
 0x180   : > { %v4689_v19 = vadd.f32 %v2967_v18, %v2831_v39  ;;  %v2970_v49 = vadd.f32 %v2969_v17, %v2968_v46  ;;  %v2859_v47 = vpop.f32.mrb[56].mxu0 }
 0x181   : > { %v2860_v52 = vpop.f32.mrb[57].mxu0 }
 0x182   : > { %v4691_v32 = vadd.f32 %v2970_v49, %v2834_v5  ;;  %v4693_v23 = vadd.f32 %v2860_v52, %v2859_v47  ;;  %v2862_v42 = vpop.f32.mrb[58].mxu0 }
 0x183   : > { %v2863_v34 = vpop.f32.mrb[59].mxu0 }
 0x184   : > { %5038 = vst [vmem:[#allocation8_spill] sm:$0xff] %v4691_v32  ;;  %v2971_v21 = vpop.f32.mrb[56].mxu1  ;;  %v4695_v15 = vadd.f32 %v2863_v34, %v2862_v42 }
 0x185   : > { %v2972_v13 = vpop.f32.mrb[57].mxu1 }
 0x186   : > { %v2973_v48 = vadd.f32 %v2972_v13, %v2971_v21  ;;  %v2974_v29 = vpop.f32.mrb[58].mxu1 }
 0x187   : > { %v2975_v0 = vpop.f32.mrb[59].mxu1 }
 0x188   : > { %v4697_v61 = vadd.f32 %v2973_v48, %v2837_v40  ;;  %v2976_v39 = vadd.f32 %v2975_v0, %v2974_v29  ;;  %v2865_v5 = vpop.f32.mrb[60].mxu0 }
 0x189   : > { %v2866_v24 = vpop.f32.mrb[61].mxu0 }
 0x18a   : > { %v4699_v7 = vadd.f32 %v2976_v39, %v2840_v20  ;;  %v4701_v46 = vadd.f32 %v2866_v24, %v2865_v5  ;;  %v2868_v17 = vpop.f32.mrb[62].mxu0 }
 0x18b   : > { %v2869_v47 = vpop.f32.mrb[63].mxu0 }
 0x18c   : > { %v2977_v18 = vpop.f32.mrb[60].mxu1  ;;  %v4703_v21 = vadd.f32 %v2869_v47, %v2868_v17 }
 0x18d   : > { %v2978_v49 = vpop.f32.mrb[61].mxu1 }
 0x18e   : > { %v2979_v52 = vadd.f32 %v2978_v49, %v2977_v18  ;;  %v2980_v32 = vpop.f32.mrb[62].mxu1 }
 0x18f   : > { %v2981_v42 = vpop.f32.mrb[63].mxu1 }
 0x190   : > { %v4705_v13 = vadd.f32 %v2979_v52, %v2843_v30  ;;  %v2982_v40 = vadd.f32 %v2981_v42, %v2980_v32  ;;  %v3185_v20 = vpop.f32.mrb[64].mxu0 }
 0x191   : > { %v1221_v48 = vadd.f32 %v3185_v20, %v4575_v37  ;;  %v1212_v29 = vpop.f32.mrb[65].mxu0 }
 0x192   : > { %v4707_v34 = vadd.f32 %v2982_v40, %v2846_v1  ;;  %v1213_v39 = vadd.f32 %v4567_v55, %v1212_v29  ;;  %v3186_v5 = vpop.f32.mrb[66].mxu0 }
 0x193   : > { %v4712_v24 = vadd.f32 %v4621_v54, %v1221_v48  ;;  %v1224_v17 = vadd.f32 %v3186_v5, %v4578_v36  ;;  %v1215_v49 = vpop.f32.mrb[67].mxu0 }
 0x194   : > { %v2983_v0 = vpop.f32.mrb[64].mxu1  ;;  %v4716_v30 = vadd.f32 %v4605_v38, %v1213_v39  ;;  %v1216_v47 = vadd.f32 %v4569_v62, %v1215_v49 }
 0x195   : > { %v2984_v18 = vpop.f32.mrb[65].mxu1  ;;  %v4720_v37 = vadd.f32 %v4626_v28, %v1224_v17 }
 0x196   : > { %v2985_v1 = vadd.f32 %v2984_v18, %v2983_v0  ;;  %v2986_v32 = vpop.f32.mrb[66].mxu1  ;;  %v4726_v54 = vadd.f32 %v4610_v2, %v1216_v47 }
 0x197   : > { %v2987_v52 = vpop.f32.mrb[67].mxu1 }
 0x198   : > { %v4723_v55 = vadd.f32 %v2985_v1, %v4677_v41  ;;  %v2988_v42 = vadd.f32 %v2987_v52, %v2986_v32  ;;  %v3189_v38 = vpop.f32.mrb[68].mxu0 }
 0x199   : > { %v1237_v40 = vadd.f32 %v3189_v38, %v4594_v22  ;;  %v1228_v20 = vpop.f32.mrb[69].mxu0 }
 0x19a   : > { %v4729_v36 = vadd.f32 %v2988_v42, %v4679_v25  ;;  %v1229_v62 = vadd.f32 %v4584_v3, %v1228_v20  ;;  %v3190_v28 = vpop.f32.mrb[70].mxu0 }
 0x19b   : > { %v4734_v29 = vadd.f32 %v4650_v43, %v1237_v40  ;;  %v1240_v0 = vadd.f32 %v3190_v28, %v4597_v27  ;;  %v1231_v2 = vpop.f32.mrb[71].mxu0 }
 0x19c   : > { %v2989_v48 = vpop.f32.mrb[68].mxu1  ;;  %v4738_v39 = vadd.f32 %v4636_v44, %v1229_v62  ;;  %v1232_v18 = vadd.f32 %v4588_v56, %v1231_v2 }
 0x19d   : > { %v2990_v41 = vpop.f32.mrb[69].mxu1  ;;  %v4742_v22 = vadd.f32 %v4655_v50, %v1240_v0 }
 0x19e   : > { %v2991_v25 = vadd.f32 %v2990_v41, %v2989_v48  ;;  %v2992_v5 = vpop.f32.mrb[70].mxu1  ;;  %v4748_v43 = vadd.f32 %v4641_v8, %v1232_v18 }
 0x19f   : > { %v2993_v17 = vpop.f32.mrb[71].mxu1 }
 0x1a0   : > { %v4745_v3 = vadd.f32 %v2991_v25, %v4685_v45  ;;  %v2994_v49 = vadd.f32 %v2993_v17, %v2992_v5  ;;  %v3193_v44 = vpop.f32.mrb[72].mxu0 }
 0x1a1   : > { %v1253_v1 = vadd.f32 %v3193_v44, %v4617_v4  ;;  %v1244_v32 = vpop.f32.mrb[73].mxu0 }
 0x1a2   : > { %v4751_v27 = vadd.f32 %v2994_v49, %v4687_v57  ;;  %v1245_v56 = vadd.f32 %v4603_v12, %v1244_v32  ;;  %v3194_v50 = vpop.f32.mrb[74].mxu0 }
 0x1a3   : > { %v4756_v52 = vadd.f32 %v4665_v35, %v1253_v1  ;;  %v1256_v42 = vadd.f32 %v3194_v50, %v4623_v59  ;;  %v1247_v8 = vpop.f32.mrb[75].mxu0 }
 0x1a4   : > { %v2995_v47 = vpop.f32.mrb[72].mxu1  ;;  %v4760_v38 = vadd.f32 %v4659_v11, %v1245_v56  ;;  %v1248_v20 = vadd.f32 %v4607_v9, %v1247_v8 }
 0x1a5   : > { %v2996_v45 = vpop.f32.mrb[73].mxu1  ;;  %v4764_v4 = vadd.f32 %v4667_v60, %v1256_v42 }
 0x1a6   : > { %v2997_v57 = vadd.f32 %v2996_v45, %v2995_v47  ;;  %v2998_v40 = vpop.f32.mrb[74].mxu1  ;;  %v1553_v35 = vadd.f32 %v4663_v63, %v1248_v20 }
 0x1a7   : > { %v2999_v48 = vpop.f32.mrb[75].mxu1 }
 0x1a8   : > { %v4767_v12 = vadd.f32 %v2997_v57, %v4693_v23  ;;  %v3000_v62 = vadd.f32 %v2999_v48, %v2998_v40  ;;  %v3197_v28 = vpop.f32.mrb[76].mxu0 }
 0x1a9   : > { %v1269_v11 = vadd.f32 %v3197_v28, %v4647_v14  ;;  %v1260_v41 = vpop.f32.mrb[77].mxu0 }
 0x1aa   : > { %v4771_v59 = vadd.f32 %v3000_v62, %v4695_v15  ;;  %v1261_v9 = vadd.f32 %v4633_v16, %v1260_v41  ;;  %v3198_v2 = vpop.f32.mrb[78].mxu0 }
 0x1ab   : > { %v4776_v60 = vadd.f32 %v4673_v33, %v1269_v11  ;;  %v1272_v23 = vadd.f32 %v3198_v2, %v4652_v51  ;;  %v1263_v5 = vpop.f32.mrb[79].mxu0 }
 0x1ac   : > { %v3001_v0 = vpop.f32.mrb[76].mxu1  ;;  %v4780_v63 = vadd.f32 %v4669_v6, %v1261_v9  ;;  %v1264_v17 = vadd.f32 %v4638_v53, %v1263_v5 }
 0x1ad   : > { %v3002_v25 = vpop.f32.mrb[77].mxu1  ;;  %v4784_v14 = vadd.f32 %v4675_v10, %v1272_v23 }
 0x1ae   : > { %v3003_v15 = vadd.f32 %v3002_v25, %v3001_v0  ;;  %v3004_v18 = vpop.f32.mrb[78].mxu1  ;;  %v1569_v33 = vadd.f32 %v4671_v31, %v1264_v17 }
 0x1af   : > { %v3005_v49 = vpop.f32.mrb[79].mxu1 }
 0x1b0   : > { %v4787_v16 = vadd.f32 %v3003_v15, %v4701_v46  ;;  %v3006_v44 = vadd.f32 %v3005_v49, %v3004_v18  ;;  %v3047_v1 = vpop.f32.mrb[80].mxu0 }
 0x1b1   : > { %v3048_v6 = vpop.f32.mrb[81].mxu0 }
 0x1b2   : > { %v4791_v51 = vadd.f32 %v3006_v44, %v4703_v21  ;;  %v3049_v32 = vadd.f32 %v3048_v6, %v3047_v1  ;;  %v3050_v47 = vpop.f32.mrb[82].mxu0 }
 0x1b3   : > { %v3051_v56 = vpop.f32.mrb[83].mxu0 }
 0x1b4   : > { %v3052_v50 = vadd.f32 %v3051_v56, %v3050_v47  ;;  %v4794_v53 = vadd.f32 %v3049_v32, %v4716_v30 }
 0x1b6   : > { %v4797_v10 = vadd.f32 %v3052_v50, %v4726_v54 }
 0x1b8   : > { %v3053_v46 = vpop.f32.mrb[84].mxu0 }
 0x1b9   : > { %v3054_v45 = vpop.f32.mrb[85].mxu0 }
 0x1ba   : > { %v3055_v42 = vadd.f32 %v3054_v45, %v3053_v46  ;;  %v3056_v31 = vpop.f32.mrb[86].mxu0 }
 0x1bb   : > { %v3057_v8 = vpop.f32.mrb[87].mxu0 }
 0x1bc   : > { %v3058_v57 = vadd.f32 %v3057_v8, %v3056_v31  ;;  %v3329_v21 = vadd.f32 %v3055_v42, %v4712_v24 }
 0x1be   : > { %v4801_v40 = vadd.f32 %v3058_v57, %v4720_v37 }
 0x1c0   : > { %v3059_v20 = vpop.f32.mrb[88].mxu0 }
 0x1c1   : > { %v3060_v48 = vpop.f32.mrb[89].mxu0 }
 0x1c2   : > { %v3061_v62 = vadd.f32 %v3060_v48, %v3059_v20  ;;  %v3062_v28 = vpop.f32.mrb[90].mxu0 }
 0x1c3   : > { %v3063_v30 = vpop.f32.mrb[91].mxu0 }
 0x1c4   : > { %v3064_v11 = vadd.f32 %v3063_v30, %v3062_v28  ;;  %v4804_v54 = vadd.f32 %v3061_v62, %v4738_v39 }
 0x1c6   : > { %v4807_v41 = vadd.f32 %v3064_v11, %v4748_v43 }
 0x1c8   : > { %v3065_v0 = vpop.f32.mrb[92].mxu0 }
 0x1c9   : > { %v3066_v9 = vpop.f32.mrb[93].mxu0 }
 0x1ca   : > { %v3067_v2 = vadd.f32 %v3066_v9, %v3065_v0  ;;  %v3068_v25 = vpop.f32.mrb[94].mxu0 }
 0x1cb   : > { %v3069_v24 = vpop.f32.mrb[95].mxu0 }
 0x1cc   : > { %v3070_v23 = vadd.f32 %v3069_v24, %v3068_v25  ;;  %v4810_v37 = vadd.f32 %v3067_v2, %v4734_v29 }
 0x1ce   : > { %v4813_v5 = vadd.f32 %v3070_v23, %v4742_v22 }
 0x1d0   : > { %v3071_v15 = vpop.f32.mrb[96].mxu0 }
 0x1d1   : > { %v3072_v18 = vpop.f32.mrb[97].mxu0 }
 0x1d2   : > { %v3073_v17 = vadd.f32 %v3072_v18, %v3071_v15  ;;  %v3074_v39 = vpop.f32.mrb[98].mxu0 }
 0x1d3   : > { %v3075_v49 = vpop.f32.mrb[99].mxu0 }
 0x1d4   : > { %v3076_v44 = vadd.f32 %v3075_v49, %v3074_v39  ;;  %v4816_v43 = vadd.f32 %v3073_v17, %v4760_v38 }
 0x1d6   : > { %v4818_v1 = vadd.f32 %v3076_v44, %v1553_v35 }
 0x1d8   : > { %v3077_v6 = vpop.f32.mrb[100].mxu0 }
 0x1d9   : > { %v3078_v32 = vpop.f32.mrb[101].mxu0 }
 0x1da   : > { %v3079_v47 = vadd.f32 %v3078_v32, %v3077_v6  ;;  %v3080_v56 = vpop.f32.mrb[102].mxu0 }
 0x1db   : > { %v3081_v29 = vpop.f32.mrb[103].mxu0 }
 0x1dc   : > { %v3082_v50 = vadd.f32 %v3081_v29, %v3080_v56  ;;  %v4821_v22 = vadd.f32 %v3079_v47, %v4756_v52 }
 0x1de   : > { %v4824_v46 = vadd.f32 %v3082_v50, %v4764_v4 }
 0x1e0   : > { %v3083_v45 = vpop.f32.mrb[104].mxu0 }
 0x1e1   : > { %v3084_v42 = vpop.f32.mrb[105].mxu0 }
 0x1e2   : > { %v3085_v31 = vadd.f32 %v3084_v42, %v3083_v45  ;;  %v3086_v38 = vpop.f32.mrb[106].mxu0 }
 0x1e3   : > { %v3087_v8 = vpop.f32.mrb[107].mxu0 }
 0x1e4   : > { %v3088_v35 = vadd.f32 %v3087_v8, %v3086_v38  ;;  %v4827_v57 = vadd.f32 %v3085_v31, %v4780_v63 }
 0x1e6   : > { %v4829_v20 = vadd.f32 %v3088_v35, %v1569_v33 }
 0x1e8   : > { %v3089_v48 = vpop.f32.mrb[108].mxu0 }
 0x1e9   : > { %v3090_v62 = vpop.f32.mrb[109].mxu0 }
 0x1ea   : > { %v3091_v28 = vadd.f32 %v3090_v62, %v3089_v48  ;;  %v3092_v52 = vpop.f32.mrb[110].mxu0 }
 0x1eb   : > { %v3093_v30 = vpop.f32.mrb[111].mxu0 }
 0x1ec   : > { %v3094_v11 = vadd.f32 %v3093_v30, %v3092_v52  ;;  %v4835_v4 = vadd.f32 %v3091_v28, %v4776_v60 }
 0x1ee   : > { %v4838_v0 = vadd.f32 %v3094_v11, %v4784_v14 }
 0x1f0   : > { %v3095_v63 = vpop.f32.mrb[112].mxu0 }
 0x1f1   : > { %v3096_v9 = vpop.f32.mrb[113].mxu0 }
 0x1f2   : > { %v3097_v2 = vadd.f32 %v3096_v9, %v3095_v63  ;;  %v3098_v25 = vpop.f32.mrb[114].mxu0 }
 0x1f3   : > { %v3099_v15 = vpop.f32.mrb[115].mxu0 }
 0x1f4   : > { %v3281_v33 = vpop.f32.mrb[80].mxu1  ;;  %v3100_v39 = vadd.f32 %v3099_v15, %v3098_v25  ;;  %v4843_v49 = vadd.f32 %v4681_v58, %v3097_v2  ;;  %v5039_v2 = vld [vmem:[#allocation8_spill] sm:$0xff] }
 0x1f5   : > { %v3330_v24 = vadd.f32 %v3329_v21, %v3281_v33  ;;  %v2192_v23 = vpop.f32.mrb[81].mxu1 }
 0x1f6   : > { %v3334_v18 = vadd.f32 %v4794_v53, %v2192_v23  ;;  %v3282_v17 = vpop.f32.mrb[82].mxu1  ;;  %v4852_v53 = vadd.f32 %v4683_v26, %v3100_v39 }
 0x1f7   : > { %2353 = vst [vmem:[%s4845_s9 + $0x10] sm:$0xff] %v3330_v24  ;;  %v3338_v60 = vadd.f32 %v4801_v40, %v3282_v17  ;;  %v2195_v14 = vpop.f32.mrb[83].mxu1  ;;  %v2422_v56 = vmul.f32 %v3330_v24, %v3330_v24 }
 0x1f8   : > { %2351 = vst [vmem:[%s4845_s9] sm:$0xff] %v3334_v18  ;;  %v3342_v21 = vadd.f32 %v4797_v10, %v2195_v14  ;;  %v2420_v44 = vmul.f32 %v3334_v18, %v3334_v18  ;;  %v3101_v32 = vpop.f32.mrb[116].mxu0 }
 0x1f9   : > { %2354 = vst [vmem:[%s4845_s9 + $0x18] sm:$0xff] %v3338_v60  ;;  %v3102_v47 = vpop.f32.mrb[117].mxu0  ;;  %v2423_v31 = vmul.f32 %v3338_v60, %v3338_v60 }
 0x1fa   : > { %2352 = vst [vmem:[%s4845_s9 + $0x8] sm:$0xff] %v3342_v21  ;;  %v2383_v58 = vadd.f32 %v3342_v21, %v3334_v18  ;;  %v2421_v6 = vmul.f32 %v3342_v21, %v3342_v21  ;;  %v3103_v40 = vadd.f32 %v3102_v47, %v3101_v32  ;;  %v3104_v42 = vpop.f32.mrb[118].mxu0 }
 0x1fb   : > { %v3105_v38 = vpop.f32.mrb[119].mxu0 }
 0x1fc   : > { %v2384_v29 = vadd.f32 %v3330_v24, %v2383_v58  ;;  %v2452_v50 = vadd.f32 %v2421_v6, %v2420_v44  ;;  %v3285_v45 = vpop.f32.mrb[84].mxu1  ;;  %v3106_v28 = vadd.f32 %v3105_v38, %v3104_v42  ;;  %v4861_v11 = vadd.f32 %v4689_v19, %v3103_v40 }
 0x1fd   : > { %v3346_v10 = vadd.f32 %v4810_v37, %v3285_v45  ;;  %v2208_v26 = vpop.f32.mrb[85].mxu1 }
 0x1fe   : > { %v2453_v8 = vadd.f32 %v2452_v50, %v2422_v56  ;;  %v3350_v35 = vadd.f32 %v4804_v54, %v2208_v26  ;;  %v2385_v48 = vadd.f32 %v3338_v60, %v2384_v29  ;;  %v3286_v62 = vpop.f32.mrb[86].mxu1  ;;  %v4867_v54 = vadd.f32 %v5039_v2, %v3106_v28 }
 0x1ff   : > { %2357 = vst [vmem:[%s4845_s9 + $0x30] sm:$0xff] %v3346_v10  ;;  %v3354_v52 = vadd.f32 %v4813_v5, %v3286_v62  ;;  %v2211_v30 = vpop.f32.mrb[87].mxu1  ;;  %v2426_v18 = vmul.f32 %v3346_v10, %v3346_v10 }
 0x200   : > { %2355 = vst [vmem:[%s4845_s9 + $0x20] sm:$0xff] %v3350_v35  ;;  %v2386_v63 = vadd.f32 %v3350_v35, %v2385_v48  ;;  %v2424_v37 = vmul.f32 %v3350_v35, %v3350_v35  ;;  %v2454_v9 = vadd.f32 %v2453_v8, %v2423_v31  ;;  %v3358_v33 = vadd.f32 %v4807_v41, %v2211_v30  ;;  %v3107_v15 = vpop.f32.mrb[120].mxu0 }
 0x201   : > { %2358 = vst [vmem:[%s4845_s9 + $0x38] sm:$0xff] %v3354_v52  ;;  %v3108_v5 = vpop.f32.mrb[121].mxu0  ;;  %v2427_v21 = vmul.f32 %v3354_v52, %v3354_v52 }
 0x202   : > { %v2455_v25 = vadd.f32 %v2454_v9, %v2424_v37  ;;  %2356 = vst [vmem:[%s4845_s9 + $0x28] sm:$0xff] %v3358_v33  ;;  %v2387_v24 = vadd.f32 %v3358_v33, %v2386_v63  ;;  %v2425_v23 = vmul.f32 %v3358_v33, %v3358_v33  ;;  %v3109_v60 = vadd.f32 %v3108_v5, %v3107_v15  ;;  %v3110_v14 = vpop.f32.mrb[122].mxu0 }
 0x203   : > { %v3111_v58 = vpop.f32.mrb[123].mxu0 }
 0x204   : > { %v2388_v19 = vadd.f32 %v3346_v10, %v2387_v24  ;;  %v2456_v17 = vadd.f32 %v2455_v25, %v2425_v23  ;;  %v3289_v39 = vpop.f32.mrb[88].mxu1  ;;  %v3112_v29 = vadd.f32 %v3111_v58, %v3110_v14  ;;  %v4875_v40 = vadd.f32 %v4697_v61, %v3109_v60 }
 0x205   : > { %v3362_v41 = vadd.f32 %v4821_v22, %v3289_v39  ;;  %v2224_v44 = vpop.f32.mrb[89].mxu1 }
 0x206   : > { %v2457_v6 = vadd.f32 %v2456_v17, %v2426_v18  ;;  %v3366_v32 = vadd.f32 %v4816_v43, %v2224_v44  ;;  %v2389_v47 = vadd.f32 %v3354_v52, %v2388_v19  ;;  %v3290_v56 = vpop.f32.mrb[90].mxu1  ;;  %v4881_v43 = vadd.f32 %v4699_v7, %v3112_v29 }
 0x207   : > { %2361 = vst [vmem:[%s4845_s9 + $0x50] sm:$0xff] %v3362_v41  ;;  %v3370_v50 = vadd.f32 %v4824_v46, %v3290_v56  ;;  %v2227_v45 = vpop.f32.mrb[91].mxu1  ;;  %v2430_v48 = vmul.f32 %v3362_v41, %v3362_v41 }
 0x208   : > { %2359 = vst [vmem:[%s4845_s9 + $0x40] sm:$0xff] %v3366_v32  ;;  %v2390_v42 = vadd.f32 %v3366_v32, %v2389_v47  ;;  %v2428_v22 = vmul.f32 %v3366_v32, %v3366_v32  ;;  %v2458_v31 = vadd.f32 %v2457_v6, %v2427_v21  ;;  %v3374_v10 = vadd.f32 %v4818_v1, %v2227_v45  ;;  %v3113_v35 = vpop.f32.mrb[124].mxu0 }
 0x209   : > { %2362 = vst [vmem:[%s4845_s9 + $0x58] sm:$0xff] %v3370_v50  ;;  %v3114_v46 = vpop.f32.mrb[125].mxu0  ;;  %v2431_v63 = vmul.f32 %v3370_v50, %v3370_v50 }
 0x20a   : > { %v2459_v26 = vadd.f32 %v2458_v31, %v2428_v22  ;;  %2360 = vst [vmem:[%s4845_s9 + $0x48] sm:$0xff] %v3374_v10  ;;  %v2391_v38 = vadd.f32 %v3374_v10, %v2390_v42  ;;  %v2429_v8 = vmul.f32 %v3374_v10, %v3374_v10  ;;  %v3115_v52 = vadd.f32 %v3114_v46, %v3113_v35  ;;  %v3116_v30 = vpop.f32.mrb[126].mxu0 }
 0x20b   : > { %v3117_v7 = vpop.f32.mrb[127].mxu0 }
 0x20c   : > { %v2392_v61 = vadd.f32 %v3362_v41, %v2391_v38  ;;  %v2460_v62 = vadd.f32 %v2459_v26, %v2429_v8  ;;  %v3293_v28 = vpop.f32.mrb[92].mxu1  ;;  %v3118_v24 = vadd.f32 %v3117_v7, %v3116_v30  ;;  %v3404_v5 = vadd.f32 %v4705_v13, %v3115_v52 }
 0x20d   : > { %v3378_v1 = vadd.f32 %v4835_v4, %v3293_v28  ;;  %v2240_v37 = vpop.f32.mrb[93].mxu1 }
 0x20e   : > { %v2461_v9 = vadd.f32 %v2460_v62, %v2430_v48  ;;  %v3382_v33 = vadd.f32 %v4827_v57, %v2240_v37  ;;  %v2393_v2 = vadd.f32 %v3370_v50, %v2392_v61  ;;  %v3294_v25 = vpop.f32.mrb[94].mxu1  ;;  %v3410_v39 = vadd.f32 %v4707_v34, %v3118_v24 }
 0x20f   : > { %2365 = vst [vmem:[%s4845_s9 + $0x70] sm:$0xff] %v3378_v1  ;;  %v3386_v23 = vadd.f32 %v4838_v0, %v3294_v25  ;;  %v2243_v15 = vpop.f32.mrb[95].mxu1  ;;  %v2434_v0 = vmul.f32 %v3378_v1, %v3378_v1 }
 0x210   : > { %2363 = vst [vmem:[%s4845_s9 + $0x60] sm:$0xff] %v3382_v33  ;;  %v2394_v18 = vadd.f32 %v3382_v33, %v2393_v2  ;;  %v2432_v19 = vmul.f32 %v3382_v33, %v3382_v33  ;;  %v2462_v4 = vadd.f32 %v2461_v9, %v2431_v63  ;;  %v3390_v17 = vadd.f32 %v4829_v20, %v2243_v15  ;;  %v3119_v21 = vpop.f32.mrb[128].mxu0 }
 0x211   : > { %2366 = vst [vmem:[%s4845_s9 + $0x78] sm:$0xff] %v3386_v23  ;;  %v3120_v41 = vpop.f32.mrb[129].mxu0  ;;  %v2435_v47 = vmul.f32 %v3386_v23, %v3386_v23 }
 0x212   : > { %v2463_v57 = vadd.f32 %v2462_v4, %v2432_v19  ;;  %2364 = vst [vmem:[%s4845_s9 + $0x68] sm:$0xff] %v3390_v17  ;;  %v2395_v60 = vadd.f32 %v3390_v17, %v2394_v18  ;;  %v2433_v14 = vmul.f32 %v3390_v17, %v3390_v17  ;;  %v3121_v6 = vadd.f32 %v3120_v41, %v3119_v21  ;;  %v3122_v32 = vpop.f32.mrb[130].mxu0 }
 0x213   : > { %v3123_v34 = vpop.f32.mrb[131].mxu0 }
 0x214   : > { %v2396_v44 = vadd.f32 %v3378_v1, %v2395_v60  ;;  %v2464_v58 = vadd.f32 %v2463_v57, %v2433_v14  ;;  %v3297_v13 = vpop.f32.mrb[0].mxu1  ;;  %v3124_v22 = vadd.f32 %v3123_v34, %v3122_v32  ;;  %v3419_v26 = vadd.f32 %v4723_v55, %v3121_v6 }
 0x215   : > { %v3393_v20 = vadd.f32 %v4861_v11, %v3297_v13  ;;  %v2256_v56 = vpop.f32.mrb[1].mxu1 }
 0x216   : > { %v2465_v29 = vadd.f32 %v2464_v58, %v2434_v0  ;;  %v3396_v50 = vadd.f32 %v4843_v49, %v2256_v56  ;;  %v2397_v45 = vadd.f32 %v3386_v23, %v2396_v44  ;;  %v3298_v42 = vpop.f32.mrb[2].mxu1  ;;  %v3425_v46 = vadd.f32 %v4729_v36, %v3124_v22 }
 0x217   : > { %2369 = vst [vmem:[%s4845_s9 + $0x90] sm:$0xff] %v3393_v20  ;;  %v3399_v31 = vadd.f32 %v4867_v54, %v3298_v42  ;;  %v2259_v10 = vpop.f32.mrb[3].mxu1  ;;  %v2438_v54 = vmul.f32 %v3393_v20, %v3393_v20 }
 0x218   : > { %2367 = vst [vmem:[%s4845_s9 + $0x80] sm:$0xff] %v3396_v50  ;;  %v2398_v38 = vadd.f32 %v3396_v50, %v2397_v45  ;;  %v2436_v8 = vmul.f32 %v3396_v50, %v3396_v50  ;;  %v2466_v11 = vadd.f32 %v2465_v29, %v2435_v47  ;;  %v3402_v35 = vadd.f32 %v4852_v53, %v2259_v10  ;;  %v3125_v62 = vpop.f32.mrb[132].mxu0 }
 0x219   : > { %2370 = vst [vmem:[%s4845_s9 + $0x98] sm:$0xff] %v3399_v31  ;;  %v3126_v28 = vpop.f32.mrb[133].mxu0  ;;  %v2439_v37 = vmul.f32 %v3399_v31, %v3399_v31 }
 0x21a   : > { %v2467_v49 = vadd.f32 %v2466_v11, %v2436_v8  ;;  %2368 = vst [vmem:[%s4845_s9 + $0x88] sm:$0xff] %v3402_v35  ;;  %v2399_v48 = vadd.f32 %v3402_v35, %v2398_v38  ;;  %v2437_v61 = vmul.f32 %v3402_v35, %v3402_v35  ;;  %v3127_v63 = vadd.f32 %v3126_v28, %v3125_v62  ;;  %v3128_v1 = vpop.f32.mrb[134].mxu0 }
 0x21b   : > { %v3129_v9 = vpop.f32.mrb[135].mxu0 }
 0x21c   : > { %v2400_v52 = vadd.f32 %v3393_v20, %v2399_v48  ;;  %v2468_v30 = vadd.f32 %v2467_v49, %v2437_v61  ;;  %v3301_v55 = vpop.f32.mrb[4].mxu1  ;;  %v3130_v24 = vadd.f32 %v3129_v9, %v3128_v1  ;;  %v3416_v18 = vadd.f32 %v4745_v3, %v3127_v63 }
 0x21d   : > { %v3405_v7 = vadd.f32 %v3404_v5, %v3301_v55  ;;  %v2272_v53 = vpop.f32.mrb[5].mxu1 }
 0x21e   : > { %v2469_v36 = vadd.f32 %v2468_v30, %v2438_v54  ;;  %v3408_v33 = vadd.f32 %v4875_v40, %v2272_v53  ;;  %v2401_v2 = vadd.f32 %v3399_v31, %v2400_v52  ;;  %v3302_v25 = vpop.f32.mrb[6].mxu1  ;;  %v3422_v57 = vadd.f32 %v4751_v27, %v3130_v24 }
 0x21f   : > { %2373 = vst [vmem:[%s4845_s9 + $0xb0] sm:$0xff] %v3405_v7  ;;  %v3411_v23 = vadd.f32 %v3410_v39, %v3302_v25  ;;  %v2275_v15 = vpop.f32.mrb[7].mxu1  ;;  %v2442_v39 = vmul.f32 %v3405_v7, %v3405_v7 }
 0x220   : > { %2371 = vst [vmem:[%s4845_s9 + $0xa0] sm:$0xff] %v3408_v33  ;;  %v2402_v19 = vadd.f32 %v3408_v33, %v2401_v2  ;;  %v2440_v4 = vmul.f32 %v3408_v33, %v3408_v33  ;;  %v2470_v17 = vadd.f32 %v2469_v36, %v2439_v37  ;;  %v3414_v5 = vadd.f32 %v4881_v43, %v2275_v15  ;;  %v3131_v21 = vpop.f32.mrb[136].mxu0 }
 0x221   : > { %2374 = vst [vmem:[%s4845_s9 + $0xb8] sm:$0xff] %v3411_v23  ;;  %v3132_v41 = vpop.f32.mrb[137].mxu0  ;;  %v2443_v6 = vmul.f32 %v3411_v23, %v3411_v23 }
 0x222   : > { %v2471_v60 = vadd.f32 %v2470_v17, %v2440_v4  ;;  %2372 = vst [vmem:[%s4845_s9 + $0xa8] sm:$0xff] %v3414_v5  ;;  %v2403_v40 = vadd.f32 %v3414_v5, %v2402_v19  ;;  %v2441_v14 = vmul.f32 %v3414_v5, %v3414_v5  ;;  %v3133_v58 = vadd.f32 %v3132_v41, %v3131_v21  ;;  %v3134_v13 = vpop.f32.mrb[138].mxu0 }
 0x223   : > { %v3135_v47 = vpop.f32.mrb[139].mxu0 }
 0x224   : > { %v2404_v0 = vadd.f32 %v3405_v7, %v2403_v40  ;;  %v2472_v44 = vadd.f32 %v2471_v60, %v2441_v14  ;;  %v3305_v3 = vpop.f32.mrb[8].mxu1  ;;  %v3136_v29 = vadd.f32 %v3135_v47, %v3134_v13  ;;  %v3431_v42 = vadd.f32 %v4767_v12, %v3133_v58 }
 0x225   : > { %v3417_v32 = vadd.f32 %v3416_v18, %v3305_v3  ;;  %v2288_v43 = vpop.f32.mrb[9].mxu1 }
 0x226   : > { %v2473_v27 = vadd.f32 %v2472_v44, %v2442_v39  ;;  %v3420_v20 = vadd.f32 %v3419_v26, %v2288_v43  ;;  %v2405_v56 = vadd.f32 %v3411_v23, %v2404_v0  ;;  %v3306_v34 = vpop.f32.mrb[10].mxu1  ;;  %v3437_v8 = vadd.f32 %v4771_v59, %v3136_v29 }
 0x227   : > { %2377 = vst [vmem:[%s4845_s9 + $0xd0] sm:$0xff] %v3417_v32  ;;  %v3423_v50 = vadd.f32 %v3422_v57, %v3306_v34  ;;  %v2291_v45 = vpop.f32.mrb[11].mxu1  ;;  %v2446_v61 = vmul.f32 %v3417_v32, %v3417_v32 }
 0x228   : > { %2375 = vst [vmem:[%s4845_s9 + $0xc0] sm:$0xff] %v3420_v20  ;;  %v2406_v22 = vadd.f32 %v3420_v20, %v2405_v56  ;;  %v2444_v31 = vmul.f32 %v3420_v20, %v3420_v20  ;;  %v2474_v10 = vadd.f32 %v2473_v27, %v2443_v6  ;;  %v3426_v38 = vadd.f32 %v3425_v46, %v2291_v45  ;;  %v3137_v49 = vpop.f32.mrb[140].mxu0 }
 0x229   : > { %2378 = vst [vmem:[%s4845_s9 + $0xd8] sm:$0xff] %v3423_v50  ;;  %v3138_v48 = vpop.f32.mrb[141].mxu0  ;;  %v2447_v30 = vmul.f32 %v3423_v50, %v3423_v50 }
 0x22a   : > { %v2475_v11 = vadd.f32 %v2474_v10, %v2444_v31  ;;  %2376 = vst [vmem:[%s4845_s9 + $0xc8] sm:$0xff] %v3426_v38  ;;  %v2407_v26 = vadd.f32 %v3426_v38, %v2406_v22  ;;  %v2445_v35 = vmul.f32 %v3426_v38, %v3426_v38  ;;  %v3139_v54 = vadd.f32 %v3138_v48, %v3137_v49  ;;  %v3140_v52 = vpop.f32.mrb[142].mxu0 }
 0x22b   : > { %v3141_v55 = vpop.f32.mrb[143].mxu0 }
 0x22c   : > { %v2408_v62 = vadd.f32 %v3417_v32, %v2407_v26  ;;  %v2476_v28 = vadd.f32 %v2475_v11, %v2445_v35  ;;  %v3309_v12 = vpop.f32.mrb[12].mxu1  ;;  %v3428_v59 = vadd.f32 %v4787_v16, %v3139_v54  ;;  %v3142_v53 = vadd.f32 %v3141_v55, %v3140_v52 }
 0x22d   : > { %v2304_v46 = vpop.f32.mrb[13].mxu1 }
 0x22e   : > { %v2477_v63 = vadd.f32 %v2476_v28, %v2446_v61  ;;  %v3432_v1 = vadd.f32 %v3431_v42, %v2304_v46  ;;  %v2409_v37 = vadd.f32 %v3423_v50, %v2408_v62  ;;  %v3310_v7 = vpop.f32.mrb[14].mxu1  ;;  %v3429_v36 = vadd.f32 %v3428_v59, %v3309_v12 }
 0x22f   : > { %v2307_v9 = vpop.f32.mrb[15].mxu1  ;;  %v3434_v24 = vadd.f32 %v4791_v51, %v3142_v53 }
 0x230   : > { %2379 = vst [vmem:[%s4845_s9 + $0xe0] sm:$0xff] %v3432_v1  ;;  %v2410_v33 = vadd.f32 %v3432_v1, %v2409_v37  ;;  %v2448_v2 = vmul.f32 %v3432_v1, %v3432_v1  ;;  %v2478_v25 = vadd.f32 %v2477_v63, %v2447_v30  ;;  %v3438_v23 = vadd.f32 %v3437_v8, %v2307_v9 }
 0x231   : > { %2381 = vst [vmem:[%s4845_s9 + $0xf0] sm:$0xff] %v3429_v36  ;;  %v2450_v15 = vmul.f32 %v3429_v36, %v3429_v36  ;;  %v3435_v18 = vadd.f32 %v3434_v24, %v3310_v7 }
 0x232   : > { %v2479_v16 = vadd.f32 %v2478_v25, %v2448_v2  ;;  %2380 = vst [vmem:[%s4845_s9 + $0xe8] sm:$0xff] %v3438_v23  ;;  %v2411_v19 = vadd.f32 %v3438_v23, %v2410_v33  ;;  %v2449_v4 = vmul.f32 %v3438_v23, %v3438_v23 }
 0x233   : > { %2382 = vst [vmem:[%s4845_s9 + $0xf8] sm:$0xff] %v3435_v18  ;;  %v2451_v51 = vmul.f32 %v3435_v18, %v3435_v18 }
 0x234   : > { %v2412_v17 = vadd.f32 %v3429_v36, %v2411_v19  ;;  %v2480_v5 = vadd.f32 %v2479_v16, %v2449_v4 }
 0x235   : > { %3675 = shalt.err (!%p3672_p3)
}
 0x236   : > { %s3676_s29 = scalar_lea.hbm %s4927_s20, 4096  ;;  %s3680_s6 = scalar_lea.hbm %s5007_s2, 8192 }
 0x237   : > { %p3677_p4 = scmp.ne.s32.totalorder %s4927_s20, %s3676_s29  ;;  %p3681_p9 = scmp.lt.u32.totalorder %s4927_s20, %s5007_s2 }
 0x238   : > { %p3682_p10 = scmp.lt.u32.totalorder %s3680_s6, %s3676_s29  ;;  %p3684_p12 = scmp.lt.u32.totalorder %s3676_s29, %s4927_s20 }
 0x239   : > { %p3678_p7 = pnand %p3677_p4, %p3820_p5 }
 0x23a   : > { %p3683_p11 = por %p3682_p10, %p3681_p9 }
 0x23b   : > { %p3679_p8 = pneg %p3678_p7 }
 0x23c   : > { %p3685_p13 = por %p3684_p12, %p3683_p11 }
 0x23e   : > { %p3686_p0 = pnand %p3685_p13, %p3679_p8 }
 0x240   : > { %3689 = shalt.err (!%p3686_p0)
}
 0x241   : > { %s3759_s9 = smov 128   ;;  %s3760_s10 = smov 8   ;;  %v2413_v57 = vadd.f32 %v3435_v18, %v2412_v17  ;;  %v2481_v60 = vadd.f32 %v2480_v5, %v2450_v15  ;;  %vm2489_vm2 = vcmask 1040384  }
 0x242   : > { %3488 = dma.vmem_to_hbm [thread:$0]  (%p3820_p5), %s4929_s11, 4096, %s4927_s20, %s2493_s24, %s3759_s9, %s3759_s9, %s3760_s10  }
 0x243   : > { %v2414_v40 = vrot.slane %v2413_v57, 4  ;;  %v2482_v14 = vadd.f32 %v2481_v60, %v2451_v51  ;;  %s2623_s17 = sshll.u32 %s4832_s5, 1  ;;  %s2755_s19 = sshll.u32 %s3803_s16, 5 }
 0x244   : > { %s174_s25 = scalar_lea.vmem [#allocation4], %s2623_s17  ;;  %s4962_s24 = scalar_lea.hbm %s5008_s3, %s2755_s19 }
 0x245   : > { %v2415_v21 = vadd.f32 %v2414_v40, %v2413_v57  ;;  %v2483_v41 = vrot.slane %v2482_v14, 4  ;;  %s2527_s26 = sshll.u32 %s174_s25, 4  ;;  %s2498_s27 = scalar_lea.sflag [#allocation5], %s4832_s5  ;;  %s4964_s26 = int_to_ptr.vmem [resolvable:$true] %s2527_s26 }
 0x246   : > { %s3690_s28 = scalar_lea.vmem %s4964_s26, 32  ;;  %s3761_s16 = smov [#allocation4]  }
 0x247   : > { %v2416_v39 = vrot.slane %v2415_v21, 2  ;;  %v2484_v0 = vadd.f32 %v2483_v41, %v2482_v14  ;;  %p3691_p1 = scmp.ne.s32.totalorder %s4964_s26, %s3690_s28  ;;  %s3694_s29 = sshll.u32 %s3761_s16, 4  ;;  %s3695_s29 = int_to_ptr.vmem [resolvable:$false] %s3694_s29 }
 0x248   : > { %s3696_s30 = scalar_lea.vmem %s3695_s29, 64  ;;  %p3697_p4 = scmp.lt.s32.totalorder %s4964_s26, %s3695_s29 }
 0x249   : > { %v2417_v44 = vadd.f32 %v2416_v39, %v2415_v21  ;;  %v2485_v3 = vrot.slane %v2484_v0, 2  ;;  %p3692_p2 = pnand %p3691_p1, %p3820_p5  ;;  %p3698_p7 = scmp.lt.s32.totalorder %s3696_s30, %s3690_s28 }
 0x24b   : > { %v2418_v58 = vrot.slane %v2417_v44, 1  ;;  %v2486_v13 = vadd.f32 %v2485_v3, %v2484_v0  ;;  %p3693_p3 = pneg %p3692_p2  ;;  %p3699_p8 = por %p3698_p7, %p3697_p4 }
 0x24d   : > { %v2487_v6 = vrot.slane %v2486_v13, 1  ;;  %v2419_v32 = vadd.f32 %v2418_v58, %v2417_v44  ;;  %p3700_p9 = pnand %p3699_p8, %p3693_p3 }
 0x24f   : > { %v2488_v43 = vadd.f32 %v2487_v6, %v2486_v13 }
 0x251   : > { %v2490_v47 = vsel %vm2489_vm2, %v2419_v32, %v2488_v43 }
 0x252   : > { %2491 = vst [vmem:[%s174_s25] sm:$0x3] %v2490_v47 }
 0x253   : > { %3703 = shalt.err (!%p3700_p9)
}
 0x254   : > { %s3704_s5 = scalar_lea.hbm %s4962_s24, 32  ;;  %s3708_s7 = scalar_lea.hbm %s5008_s3, 64 }
 0x255   : > { %p3705_p10 = scmp.ne.s32.totalorder %s4962_s24, %s3704_s5  ;;  %p3709_p13 = scmp.lt.u32.totalorder %s4962_s24, %s5008_s3 }
 0x256   : > { %p3710_p0 = scmp.lt.u32.totalorder %s3708_s7, %s3704_s5  ;;  %p3712_p2 = scmp.lt.u32.totalorder %s3704_s5, %s4962_s24 }
 0x257   : > { %p3706_p11 = pnand %p3705_p10, %p3820_p5 }
 0x258   : > { %p3711_p1 = por %p3710_p0, %p3709_p13 }
 0x259   : > { %p3707_p12 = pneg %p3706_p11 }
 0x25a   : > { %p3713_p3 = por %p3712_p2, %p3711_p1 }
 0x25c   : > { %p3714_p4 = pnand %p3713_p3, %p3707_p12 }
 0x25e   : > { %3717 = shalt.err (!%p3714_p4)
}
 0x25f   : > { %3489 = dma.vmem_to_hbm [thread:$0]  (%p3820_p5), %s4964_s26, 32, %s4962_s24, %s2498_s27  }
 0x260 PF: > { %p3499_p7 = scmp.ge.s32.totalorder %s3756_s15, 2  ;;  %s2539_s10 = sand.u32 1, %s3744_s12  }
 0x261   : > { %s2540_s17 = scalar_lea.sflag [#allocation3], %s2539_s10 }
 0x262   : > { %p3493_p8 = pnand %p3499_p7, %p3824_p6 }
 0x264   : > { %3735 = dma.done.wait (!%p3493_p8), %s2540_s17, 4096  }
 0x265   : > { %3737 = vsyncadd (!%p3493_p8), %s2540_s17, 4294963200  ;;  %s2549_s19 = scalar_lea.sflag [#allocation5], %s2539_s10 }
 0x266   : > { %3739 = dma.done.wait (!%p3493_p8), %s2549_s19, 32  }
 0x267   : > { %3741 = vsyncadd (!%p3493_p8), %s2549_s19, 4294967264  ;;  %p17_p5 = scmp.ge.s32.totalorder %s3807_s18, 4   ;;  %s5040_s12 = smov %s3748_s13 }
 0x268   : > { %s5041_s13 = smov %s3752_s14  ;;  %s5042_s14 = smov %s3818_s21 }
 0x269   : > { %s5043_s15 = smov %s3807_s18  ;;  %19 = sbr.rel (!%p17_p5) target bundleno = 5 (0x5), region = 80 }
 0x270   :  { %2554 = vsyncpa [#allocation3], 1 }
 0x271   :  { %2556 = vsyncpa [#allocation3 + $0x1], 1 }
 0x272   :  { %2557 = vsyncpa [#allocation5], 1 }
 0x273   :  { %2559 = vsyncpa [#allocation5 + $0x1], 1 }

</bundles_post_ra>
